<compile_context>
chip_gen: v7x
topology: tpu7x:2x2x1
jax: 0.10.0
libtpu: 0.0.40
codegen_flags: <defaults>
</compile_context>

<pallas_src>
import functools
import numpy as np

import jax
import jax.numpy as jnp
from jax import lax
from jax.experimental import pallas as pl
from jax.experimental.pallas import tpu as pltpu


_INV_SQRT2 = np.float32(1.0 / np.sqrt(2.0))


def _gelu_exact(x):
    # PyTorch nn.GELU() default = exact erf formulation.
    return 0.5 * x * (1.0 + lax.erf(x * _INV_SQRT2))


def _round_up(x, m):
    return (x + m - 1) // m * m


def _river_gnn_kernel(src_col_ref, tgt_col_ref, tgt_row_ref,          # int32 edge tables
                      node_ref, riv_ref,                              # node / (padded) river feats
                      w1n_ref, w1r_ref, b1_ref, w2_ref, b2_ref,       # encoder params
                      wm1s_ref, wm1t_ref, bm1_ref, wm2_ref, bm2_ref,  # message-MLP params
                      out_ref,                                        # (N, H): output, also resident features
                      delta_ref,                                      # (N, H) scratch: per-round scatter accumulator
                      *, num_rounds, num_chunks, chunk_edges):
    N = out_ref.shape[0]
    CE = chunk_edges

    # ---- river_encoder: Linear(H+3 -> H) (split-K) -> GELU -> Linear(H -> H) ----
    h = (jnp.dot(node_ref[...], w1n_ref[...], preferred_element_type=jnp.float32)
         + jnp.dot(riv_ref[...], w1r_ref[...], preferred_element_type=jnp.float32)
         + b1_ref[...])
    h = _gelu_exact(h)
    out_ref[...] = jnp.dot(h, w2_ref[...], preferred_element_type=jnp.float32) + b2_ref[...]

    # ---- message-passing rounds: chunked one-hot gather / scatter on the MXU ----
    for _ in range(num_rounds):
        delta_ref[...] = jnp.zeros_like(delta_ref)
        for c in range(num_chunks):
            src_c = src_col_ref[pl.ds(c * CE, CE), :]   # (CE, 1) int32 (-1 = padding)
            tgt_c = tgt_col_ref[pl.ds(c * CE, CE), :]   # (CE, 1) int32
            tgt_r = tgt_row_ref[:, pl.ds(c * CE, CE)]   # (1, CE) int32

            # one-hot gather matrices: (CE, N); padded edges (-1) -> all-zero rows
            lane_iota = lax.broadcasted_iota(jnp.int32, (CE, N), 1)
            oh_src = (lane_iota == src_c).astype(jnp.float32)
            oh_tgt = (lane_iota == tgt_c).astype(jnp.float32)

            feat = out_ref[...]                                          # pre-round features
            gsrc = jnp.dot(oh_src, feat, preferred_element_type=jnp.float32)   # (CE, H)
            gtgt = jnp.dot(oh_tgt, feat, preferred_element_type=jnp.float32)   # (CE, H)

            # message MLP: Linear(2H -> H) split into src/tgt halves -> GELU -> Linear(H -> H)
            m = (jnp.dot(gsrc, wm1s_ref[...], preferred_element_type=jnp.float32)
                 + jnp.dot(gtgt, wm1t_ref[...], preferred_element_type=jnp.float32)
                 + bm1_ref[...])
            m = _gelu_exact(m)
            msg = jnp.dot(m, wm2_ref[...], preferred_element_type=jnp.float32) + bm2_ref[...]

            # one-hot scatter-add: (N, CE) @ (CE, H); padding columns are all-zero
            sub_iota = lax.broadcasted_iota(jnp.int32, (N, CE), 0)
            oh_scatter = (sub_iota == tgt_r).astype(jnp.float32)
            delta_ref[...] += jnp.dot(oh_scatter, msg, preferred_element_type=jnp.float32)

        out_ref[...] = out_ref[...] + delta_ref[...]


def river_network_gnn(node_features, river_edges, river_features, params, *,
                      max_chunk_edges=256):
    """Pallas implementation of RiverNetworkGNN.forward.

    node_features:  (N, H)  float32
    river_edges:    (E, 2)  int32   (src, tgt)
    river_features: (N, 3)  float32
    """
    N, H = node_features.shape
    E = int(river_edges.shape[0])
    num_rounds = 3 if E > 0 else 0

    # edge chunking (chunk is a multiple of 8 -> full-sublane, unmasked tiles)
    if E == 0:
        CE, E_pad = 8, 8
    elif E <= max_chunk_edges:
        CE = _round_up(E, 8)
        E_pad = CE
    else:
        CE = max_chunk_edges
        E_pad = _round_up(E, CE)
    num_chunks = E_pad // CE

    # --- glue: parameter layout + edge-table flattening (plain JAX) ---
    w1, b1, w2, b2, wm1, bm1, wm2, bm2 = (params[k] for k in
        ("w1", "b1", "w2", "b2", "wm1", "bm1", "wm2", "bm2"))
    w1_node = w1[:H, :]                                                   # (H, H)
    w1_riv = jnp.zeros((8, H), w1.dtype).at[:3, :].set(w1[H:, :])         # (8, H) tiny-K tail
    riv_pad = jnp.zeros((N, 8), jnp.float32).at[:, :3].set(
        river_features.astype(jnp.float32))                              # (N, 8)
    wm1_src = wm1[:H, :]
    wm1_tgt = wm1[H:, :]

    src = jnp.full((E_pad,), -1, jnp.int32)
    tgt = jnp.full((E_pad,), -1, jnp.int32)
    if E > 0:
        src = src.at[:E].set(river_edges[:, 0].astype(jnp.int32))
        tgt = tgt.at[:E].set(river_edges[:, 1].astype(jnp.int32))
    src_col = src.reshape(E_pad, 1)
    tgt_col = tgt.reshape(E_pad, 1)
    tgt_row = tgt.reshape(1, E_pad)

    # --- VMEM budget (with headroom) + advisory cost estimate ---
    lanes = 128
    n_lanes = _round_up(N, lanes)
    h_lanes = _round_up(H, lanes)
    vmem_est = 4 * (
        3 * N * h_lanes                       # node feats, out, delta scratch
        + N * lanes                           # padded river feats
        + 5 * H * h_lanes + 12 * h_lanes      # weights + biases (rough)
        + 3 * _round_up(E_pad, 8) * lanes     # edge index tables
        + 3 * CE * n_lanes                    # one-hot tiles
        + 4 * CE * h_lanes                    # gathered feats / messages
    )
    vmem_limit = int(min(max(2 * vmem_est, 32 * 1024 * 1024), 128 * 1024 * 1024))

    flops = (2 * N * H * H + 2 * N * 8 * H + 2 * N * H * H
             + num_rounds * num_chunks * (2 * CE * N * H * 2
                                          + 2 * CE * H * H * 3
                                          + 2 * N * CE * H))
    transcendentals = N * H + num_rounds * num_chunks * CE * H
    bytes_accessed = 4 * (2 * N * H + N * 8 + 5 * H * H + 8 * H + 4 * H + 3 * E_pad)
    cost = pl.CostEstimate(flops=int(flops),
                           transcendentals=int(transcendentals),
                           bytes_accessed=int(bytes_accessed))

    kernel = functools.partial(_river_gnn_kernel,
                               num_rounds=num_rounds,
                               num_chunks=num_chunks,
                               chunk_edges=CE)

    out = pl.pallas_call(
        kernel,
        out_shape=jax.ShapeDtypeStruct((N, H), jnp.float32),
        in_specs=[pl.BlockSpec(memory_space=pltpu.MemorySpace.VMEM)] * 15,
        out_specs=pl.BlockSpec(memory_space=pltpu.MemorySpace.VMEM),
        scratch_shapes=[pltpu.VMEM((N, H), jnp.float32)],   # per-round scatter accumulator
        compiler_params=pltpu.CompilerParams(vmem_limit_bytes=vmem_limit),
        cost_estimate=cost,
    )(src_col, tgt_col, tgt_row,
      node_features.astype(jnp.float32), riv_pad,
      w1_node, w1_riv, b1, w2, b2,
      wm1_src, wm1_tgt, bm1, wm2, bm2)
    return out


def river_network_gnn_reference(node_features, river_edges, river_features, params):
    """Pure-JAX reference matching the PyTorch forward (scatter order aside)."""
    w1, b1, w2, b2, wm1, bm1, wm2, bm2 = (params[k] for k in
        ("w1", "b1", "w2", "b2", "wm1", "bm1", "wm2", "bm2"))
    prec = lax.Precision.HIGHEST
    x = jnp.concatenate([node_features, river_features], axis=-1)
    h = _gelu_exact(jnp.dot(x, w1, precision=prec) + b1)
    feat = jnp.dot(h, w2, precision=prec) + b2
    E = int(river_edges.shape[0])
    if E > 0:
        src = river_edges[:, 0]
        tgt = river_edges[:, 1]
        for _ in range(3):
            gs = feat[src]
            gt = feat[tgt]
            m = _gelu_exact(jnp.dot(jnp.concatenate([gs, gt], axis=-1), wm1,
                                    precision=prec) + bm1)
            msg = jnp.dot(m, wm2, precision=prec) + bm2
            feat = feat.at[tgt].add(msg)
    return feat


def _linear_init(key, fan_in, fan_out):
    """Deterministic PyTorch-style nn.Linear init: U(-1/sqrt(in), 1/sqrt(in))."""
    kw, kb = jax.random.split(key)
    bound = 1.0 / np.sqrt(fan_in)
    w = jax.random.uniform(kw, (fan_in, fan_out), jnp.float32, -bound, bound)
    b = jax.random.uniform(kb, (1, fan_out), jnp.float32, -bound, bound)
    return w, b


def init_params(key, hidden_dim):
    k1, k2, k3, k4 = jax.random.split(key, 4)
    w1, b1 = _linear_init(k1, hidden_dim + 3, hidden_dim)     # river_encoder[0]
    w2, b2 = _linear_init(k2, hidden_dim, hidden_dim)         # river_encoder[2]
    wm1, bm1 = _linear_init(k3, hidden_dim * 2, hidden_dim)   # message_passing[0]
    wm2, bm2 = _linear_init(k4, hidden_dim, hidden_dim)       # message_passing[2]
    return dict(w1=w1, b1=b1, w2=w2, b2=b2,
                wm1=wm1, bm1=bm1, wm2=wm2, bm2=bm2)


if __name__ == "__main__":
    key = jax.random.PRNGKey(0)
    k_nodes, k_river, k_edges, k_params = jax.random.split(key, 4)

    hidden_dim = 128   # small but lane-aligned version of the module's 512
    num_nodes = 64
    num_edges = 16

    node_features = jax.random.normal(k_nodes, (num_nodes, hidden_dim), jnp.float32)
    river_features = jax.random.normal(k_river, (num_nodes, 3), jnp.float32)
    river_edges = jax.random.randint(k_edges, (num_edges, 2), 0, num_nodes,
                                     dtype=jnp.int32)

    params = init_params(k_params, hidden_dim)

    out = river_network_gnn(node_features, river_edges, river_features, params)
    jax.block_until_ready(out)
    assert out.shape == (num_nodes, hidden_dim) and out.dtype == jnp.float32
    assert bool(jnp.isfinite(out).all())

    ref = river_network_gnn_reference(node_features, river_edges, river_features, params)
    np.testing.assert_allclose(np.asarray(out), np.asarray(ref), rtol=2e-2, atol=2e-2)
    print("KERNEL_OK")
</pallas_src>

<mosaic_0001>
module attributes {stable_mosaic.version = 11 : i64} {
  func.func @_river_gnn_kernel(%arg0: memref<16x1xi32, #tpu.memory_space<vmem>>, %arg1: memref<16x1xi32, #tpu.memory_space<vmem>>, %arg2: memref<1x16xi32, #tpu.memory_space<vmem>>, %arg3: memref<64x128xf32, #tpu.memory_space<vmem>>, %arg4: memref<64x8xf32, #tpu.memory_space<vmem>>, %arg5: memref<128x128xf32, #tpu.memory_space<vmem>>, %arg6: memref<8x128xf32, #tpu.memory_space<vmem>>, %arg7: memref<1x128xf32, #tpu.memory_space<vmem>>, %arg8: memref<128x128xf32, #tpu.memory_space<vmem>>, %arg9: memref<1x128xf32, #tpu.memory_space<vmem>>, %arg10: memref<128x128xf32, #tpu.memory_space<vmem>>, %arg11: memref<128x128xf32, #tpu.memory_space<vmem>>, %arg12: memref<1x128xf32, #tpu.memory_space<vmem>>, %arg13: memref<128x128xf32, #tpu.memory_space<vmem>>, %arg14: memref<1x128xf32, #tpu.memory_space<vmem>>, %arg15: memref<64x128xf32, #tpu.memory_space<vmem>>, %arg16: memref<64x128xf32, #tpu.memory_space<vmem>>) attributes {dimension_semantics = [], scalar_prefetch = 0 : i64, scratch_operands = 1 : i64, tpu.core_type = #tpu.core_type<tc>} {
    %c0 = arith.constant 0 : index
    %c0_0 = arith.constant 0 : index
    %0 = vector.load %arg3[%c0, %c0_0] : memref<64x128xf32, #tpu.memory_space<vmem>>, vector<64x128xf32>
    %c0_1 = arith.constant 0 : index
    %c0_2 = arith.constant 0 : index
    %1 = vector.load %arg5[%c0_1, %c0_2] : memref<128x128xf32, #tpu.memory_space<vmem>>, vector<128x128xf32>
    %cst = arith.constant dense<0.000000e+00> : vector<64x128xf32>
    %2 = tpu.matmul %0, %1, %cst {dimension_numbers = #tpu.dot_dimension_numbers<[1], [0], [0], [1], [0, 0, 1, 1], [], []>} : vector<64x128xf32>, vector<128x128xf32>, vector<64x128xf32> -> vector<64x128xf32>
    %c0_3 = arith.constant 0 : index
    %c0_4 = arith.constant 0 : index
    %3 = vector.load %arg4[%c0_3, %c0_4] : memref<64x8xf32, #tpu.memory_space<vmem>>, vector<64x8xf32>
    %c0_5 = arith.constant 0 : index
    %c0_6 = arith.constant 0 : index
    %4 = vector.load %arg6[%c0_5, %c0_6] : memref<8x128xf32, #tpu.memory_space<vmem>>, vector<8x128xf32>
    %cst_7 = arith.constant dense<0.000000e+00> : vector<64x128xf32>
    %5 = tpu.matmul %3, %4, %cst_7 {dimension_numbers = #tpu.dot_dimension_numbers<[1], [0], [0], [1], [0, 0, 1, 1], [], []>} : vector<64x8xf32>, vector<8x128xf32>, vector<64x128xf32> -> vector<64x128xf32>
    %6 = arith.addf %2, %5 : vector<64x128xf32>
    %c0_8 = arith.constant 0 : index
    %c0_9 = arith.constant 0 : index
    %7 = vector.load %arg7[%c0_8, %c0_9] : memref<1x128xf32, #tpu.memory_space<vmem>>, vector<1x128xf32>
    %8 = vector.broadcast %7 : vector<1x128xf32> to vector<64x128xf32>
    %9 = arith.addf %6, %8 : vector<64x128xf32>
    %cst_10 = arith.constant 5.000000e-01 : f32
    %10 = vector.broadcast %cst_10 : f32 to vector<64x128xf32>
    %11 = arith.mulf %10, %9 : vector<64x128xf32>
    %cst_11 = arith.constant 0.707106769 : f32
    %12 = vector.broadcast %cst_11 : f32 to vector<64x128xf32>
    %13 = arith.mulf %9, %12 : vector<64x128xf32>
    %14 = math.erf %13 : vector<64x128xf32>
    %cst_12 = arith.constant 1.000000e+00 : f32
    %15 = vector.broadcast %cst_12 : f32 to vector<64x128xf32>
    %16 = arith.addf %15, %14 : vector<64x128xf32>
    %17 = arith.mulf %11, %16 : vector<64x128xf32>
    %c0_13 = arith.constant 0 : index
    %c0_14 = arith.constant 0 : index
    %18 = vector.load %arg8[%c0_13, %c0_14] : memref<128x128xf32, #tpu.memory_space<vmem>>, vector<128x128xf32>
    %cst_15 = arith.constant dense<0.000000e+00> : vector<64x128xf32>
    %19 = tpu.matmul %17, %18, %cst_15 {dimension_numbers = #tpu.dot_dimension_numbers<[1], [0], [0], [1], [0, 0, 1, 1], [], []>} : vector<64x128xf32>, vector<128x128xf32>, vector<64x128xf32> -> vector<64x128xf32>
    %c0_16 = arith.constant 0 : index
    %c0_17 = arith.constant 0 : index
    %20 = vector.load %arg9[%c0_16, %c0_17] : memref<1x128xf32, #tpu.memory_space<vmem>>, vector<1x128xf32>
    %21 = vector.broadcast %20 : vector<1x128xf32> to vector<64x128xf32>
    %22 = arith.addf %19, %21 : vector<64x128xf32>
    %c0_18 = arith.constant 0 : index
    %c0_19 = arith.constant 0 : index
    %23 = vector.load %arg15[%c0_18, %c0_19] : memref<64x128xf32, #tpu.memory_space<vmem>>, vector<64x128xf32>
    tpu.vector_store %arg15[%c0_18, %c0_19], %22 {strides = array<i32>} : memref<64x128xf32, #tpu.memory_space<vmem>>, vector<64x128xf32>,
    %cst_20 = arith.constant 0.000000e+00 : f32
    %24 = vector.broadcast %cst_20 : f32 to vector<64x128xf32>
    %c0_21 = arith.constant 0 : index
    %c0_22 = arith.constant 0 : index
    %25 = vector.load %arg16[%c0_21, %c0_22] : memref<64x128xf32, #tpu.memory_space<vmem>>, vector<64x128xf32>
    tpu.vector_store %arg16[%c0_21, %c0_22], %24 {strides = array<i32>} : memref<64x128xf32, #tpu.memory_space<vmem>>, vector<64x128xf32>,
    %c0_23 = arith.constant 0 : index
    %c0_24 = arith.constant 0 : index
    %26 = vector.load %arg0[%c0_23, %c0_24] : memref<16x1xi32, #tpu.memory_space<vmem>>, vector<16x1xi32>
    %c0_25 = arith.constant 0 : index
    %c0_26 = arith.constant 0 : index
    %27 = vector.load %arg1[%c0_25, %c0_26] : memref<16x1xi32, #tpu.memory_space<vmem>>, vector<16x1xi32>
    %c0_27 = arith.constant 0 : index
    %c0_28 = arith.constant 0 : index
    %28 = vector.load %arg2[%c0_27, %c0_28] : memref<1x16xi32, #tpu.memory_space<vmem>>, vector<1x16xi32>
    %29 = tpu.iota {dimensions = array<i32: 1>} : vector<16x64xi32>
    %30 = vector.broadcast %26 : vector<16x1xi32> to vector<16x64xi32>
    %31 = arith.cmpi eq, %29, %30 : vector<16x64xi32>
    %32 = arith.extui %31 : vector<16x64xi1> to vector<16x64xi32>
    %33 = arith.sitofp %32 : vector<16x64xi32> to vector<16x64xf32>
    %34 = vector.broadcast %27 : vector<16x1xi32> to vector<16x64xi32>
    %35 = arith.cmpi eq, %29, %34 : vector<16x64xi32>
    %36 = arith.extui %35 : vector<16x64xi1> to vector<16x64xi32>
    %37 = arith.sitofp %36 : vector<16x64xi32> to vector<16x64xf32>
    %c0_29 = arith.constant 0 : index
    %c0_30 = arith.constant 0 : index
    %38 = vector.load %arg15[%c0_29, %c0_30] : memref<64x128xf32, #tpu.memory_space<vmem>>, vector<64x128xf32>
    %cst_31 = arith.constant dense<0.000000e+00> : vector<16x128xf32>
    %39 = tpu.matmul %33, %38, %cst_31 {dimension_numbers = #tpu.dot_dimension_numbers<[1], [0], [0], [1], [0, 0, 1, 1], [], []>} : vector<16x64xf32>, vector<64x128xf32>, vector<16x128xf32> -> vector<16x128xf32>
    %cst_32 = arith.constant dense<0.000000e+00> : vector<16x128xf32>
    %40 = tpu.matmul %37, %38, %cst_32 {dimension_numbers = #tpu.dot_dimension_numbers<[1], [0], [0], [1], [0, 0, 1, 1], [], []>} : vector<16x64xf32>, vector<64x128xf32>, vector<16x128xf32> -> vector<16x128xf32>
    %c0_33 = arith.constant 0 : index
    %c0_34 = arith.constant 0 : index
    %41 = vector.load %arg10[%c0_33, %c0_34] : memref<128x128xf32, #tpu.memory_space<vmem>>, vector<128x128xf32>
    %cst_35 = arith.constant dense<0.000000e+00> : vector<16x128xf32>
    %42 = tpu.matmul %39, %41, %cst_35 {dimension_numbers = #tpu.dot_dimension_numbers<[1], [0], [0], [1], [0, 0, 1, 1], [], []>} : vector<16x128xf32>, vector<128x128xf32>, vector<16x128xf32> -> vector<16x128xf32>
    %c0_36 = arith.constant 0 : index
    %c0_37 = arith.constant 0 : index
    %43 = vector.load %arg11[%c0_36, %c0_37] : memref<128x128xf32, #tpu.memory_space<vmem>>, vector<128x128xf32>
    %cst_38 = arith.constant dense<0.000000e+00> : vector<16x128xf32>
    %44 = tpu.matmul %40, %43, %cst_38 {dimension_numbers = #tpu.dot_dimension_numbers<[1], [0], [0], [1], [0, 0, 1, 1], [], []>} : vector<16x128xf32>, vector<128x128xf32>, vector<16x128xf32> -> vector<16x128xf32>
    %45 = arith.addf %42, %44 : vector<16x128xf32>
    %c0_39 = arith.constant 0 : index
    %c0_40 = arith.constant 0 : index
    %46 = vector.load %arg12[%c0_39, %c0_40] : memref<1x128xf32, #tpu.memory_space<vmem>>, vector<1x128xf32>
    %47 = vector.broadcast %46 : vector<1x128xf32> to vector<16x128xf32>
    %48 = arith.addf %45, %47 : vector<16x128xf32>
    %cst_41 = arith.constant 5.000000e-01 : f32
    %49 = vector.broadcast %cst_41 : f32 to vector<16x128xf32>
    %50 = arith.mulf %49, %48 : vector<16x128xf32>
    %cst_42 = arith.constant 0.707106769 : f32
    %51 = vector.broadcast %cst_42 : f32 to vector<16x128xf32>
    %52 = arith.mulf %48, %51 : vector<16x128xf32>
    %53 = math.erf %52 : vector<16x128xf32>
    %cst_43 = arith.constant 1.000000e+00 : f32
    %54 = vector.broadcast %cst_43 : f32 to vector<16x128xf32>
    %55 = arith.addf %54, %53 : vector<16x128xf32>
    %56 = arith.mulf %50, %55 : vector<16x128xf32>
    %c0_44 = arith.constant 0 : index
    %c0_45 = arith.constant 0 : index
    %57 = vector.load %arg13[%c0_44, %c0_45] : memref<128x128xf32, #tpu.memory_space<vmem>>, vector<128x128xf32>
    %cst_46 = arith.constant dense<0.000000e+00> : vector<16x128xf32>
    %58 = tpu.matmul %56, %57, %cst_46 {dimension_numbers = #tpu.dot_dimension_numbers<[1], [0], [0], [1], [0, 0, 1, 1], [], []>} : vector<16x128xf32>, vector<128x128xf32>, vector<16x128xf32> -> vector<16x128xf32>
    %c0_47 = arith.constant 0 : index
    %c0_48 = arith.constant 0 : index
    %59 = vector.load %arg14[%c0_47, %c0_48] : memref<1x128xf32, #tpu.memory_space<vmem>>, vector<1x128xf32>
    %60 = vector.broadcast %59 : vector<1x128xf32> to vector<16x128xf32>
    %61 = arith.addf %58, %60 : vector<16x128xf32>
    %62 = tpu.iota {dimensions = array<i32: 0>} : vector<64x16xi32>
    %63 = vector.broadcast %28 : vector<1x16xi32> to vector<64x16xi32>
    %64 = arith.cmpi eq, %62, %63 : vector<64x16xi32>
    %65 = arith.extui %64 : vector<64x16xi1> to vector<64x16xi32>
    %66 = arith.sitofp %65 : vector<64x16xi32> to vector<64x16xf32>
    %c0_49 = arith.constant 0 : index
    %c0_50 = arith.constant 0 : index
    %67 = vector.load %arg16[%c0_49, %c0_50] : memref<64x128xf32, #tpu.memory_space<vmem>>, vector<64x128xf32>
    %cst_51 = arith.constant dense<0.000000e+00> : vector<64x128xf32>
    %68 = tpu.matmul %66, %61, %cst_51 {dimension_numbers = #tpu.dot_dimension_numbers<[1], [0], [0], [1], [0, 0, 1, 1], [], []>} : vector<64x16xf32>, vector<16x128xf32>, vector<64x128xf32> -> vector<64x128xf32>
    %69 = arith.addf %67, %68 : vector<64x128xf32>
    %c0_52 = arith.constant 0 : index
    %c0_53 = arith.constant 0 : index
    %70 = vector.load %arg16[%c0_52, %c0_53] : memref<64x128xf32, #tpu.memory_space<vmem>>, vector<64x128xf32>
    tpu.vector_store %arg16[%c0_52, %c0_53], %69 {strides = array<i32>} : memref<64x128xf32, #tpu.memory_space<vmem>>, vector<64x128xf32>,
    %c0_54 = arith.constant 0 : index
    %c0_55 = arith.constant 0 : index
    %71 = vector.load %arg15[%c0_54, %c0_55] : memref<64x128xf32, #tpu.memory_space<vmem>>, vector<64x128xf32>
    %c0_56 = arith.constant 0 : index
    %c0_57 = arith.constant 0 : index
    %72 = vector.load %arg16[%c0_56, %c0_57] : memref<64x128xf32, #tpu.memory_space<vmem>>, vector<64x128xf32>
    %73 = arith.addf %71, %72 : vector<64x128xf32>
    %c0_58 = arith.constant 0 : index
    %c0_59 = arith.constant 0 : index
    %74 = vector.load %arg15[%c0_58, %c0_59] : memref<64x128xf32, #tpu.memory_space<vmem>>, vector<64x128xf32>
    tpu.vector_store %arg15[%c0_58, %c0_59], %73 {strides = array<i32>} : memref<64x128xf32, #tpu.memory_space<vmem>>, vector<64x128xf32>,
    %cst_60 = arith.constant 0.000000e+00 : f32
    %75 = vector.broadcast %cst_60 : f32 to vector<64x128xf32>
    %c0_61 = arith.constant 0 : index
    %c0_62 = arith.constant 0 : index
    %76 = vector.load %arg16[%c0_61, %c0_62] : memref<64x128xf32, #tpu.memory_space<vmem>>, vector<64x128xf32>
    tpu.vector_store %arg16[%c0_61, %c0_62], %75 {strides = array<i32>} : memref<64x128xf32, #tpu.memory_space<vmem>>, vector<64x128xf32>,
    %c0_63 = arith.constant 0 : index
    %c0_64 = arith.constant 0 : index
    %77 = vector.load %arg0[%c0_63, %c0_64] : memref<16x1xi32, #tpu.memory_space<vmem>>, vector<16x1xi32>
    %c0_65 = arith.constant 0 : index
    %c0_66 = arith.constant 0 : index
    %78 = vector.load %arg1[%c0_65, %c0_66] : memref<16x1xi32, #tpu.memory_space<vmem>>, vector<16x1xi32>
    %c0_67 = arith.constant 0 : index
    %c0_68 = arith.constant 0 : index
    %79 = vector.load %arg2[%c0_67, %c0_68] : memref<1x16xi32, #tpu.memory_space<vmem>>, vector<1x16xi32>
    %80 = tpu.iota {dimensions = array<i32: 1>} : vector<16x64xi32>
    %81 = vector.broadcast %77 : vector<16x1xi32> to vector<16x64xi32>
    %82 = arith.cmpi eq, %80, %81 : vector<16x64xi32>
    %83 = arith.extui %82 : vector<16x64xi1> to vector<16x64xi32>
    %84 = arith.sitofp %83 : vector<16x64xi32> to vector<16x64xf32>
    %85 = vector.broadcast %78 : vector<16x1xi32> to vector<16x64xi32>
    %86 = arith.cmpi eq, %80, %85 : vector<16x64xi32>
    %87 = arith.extui %86 : vector<16x64xi1> to vector<16x64xi32>
    %88 = arith.sitofp %87 : vector<16x64xi32> to vector<16x64xf32>
    %c0_69 = arith.constant 0 : index
    %c0_70 = arith.constant 0 : index
    %89 = vector.load %arg15[%c0_69, %c0_70] : memref<64x128xf32, #tpu.memory_space<vmem>>, vector<64x128xf32>
    %cst_71 = arith.constant dense<0.000000e+00> : vector<16x128xf32>
    %90 = tpu.matmul %84, %89, %cst_71 {dimension_numbers = #tpu.dot_dimension_numbers<[1], [0], [0], [1], [0, 0, 1, 1], [], []>} : vector<16x64xf32>, vector<64x128xf32>, vector<16x128xf32> -> vector<16x128xf32>
    %cst_72 = arith.constant dense<0.000000e+00> : vector<16x128xf32>
    %91 = tpu.matmul %88, %89, %cst_72 {dimension_numbers = #tpu.dot_dimension_numbers<[1], [0], [0], [1], [0, 0, 1, 1], [], []>} : vector<16x64xf32>, vector<64x128xf32>, vector<16x128xf32> -> vector<16x128xf32>
    %c0_73 = arith.constant 0 : index
    %c0_74 = arith.constant 0 : index
    %92 = vector.load %arg10[%c0_73, %c0_74] : memref<128x128xf32, #tpu.memory_space<vmem>>, vector<128x128xf32>
    %cst_75 = arith.constant dense<0.000000e+00> : vector<16x128xf32>
    %93 = tpu.matmul %90, %92, %cst_75 {dimension_numbers = #tpu.dot_dimension_numbers<[1], [0], [0], [1], [0, 0, 1, 1], [], []>} : vector<16x128xf32>, vector<128x128xf32>, vector<16x128xf32> -> vector<16x128xf32>
    %c0_76 = arith.constant 0 : index
    %c0_77 = arith.constant 0 : index
    %94 = vector.load %arg11[%c0_76, %c0_77] : memref<128x128xf32, #tpu.memory_space<vmem>>, vector<128x128xf32>
    %cst_78 = arith.constant dense<0.000000e+00> : vector<16x128xf32>
    %95 = tpu.matmul %91, %94, %cst_78 {dimension_numbers = #tpu.dot_dimension_numbers<[1], [0], [0], [1], [0, 0, 1, 1], [], []>} : vector<16x128xf32>, vector<128x128xf32>, vector<16x128xf32> -> vector<16x128xf32>
    %96 = arith.addf %93, %95 : vector<16x128xf32>
    %c0_79 = arith.constant 0 : index
    %c0_80 = arith.constant 0 : index
    %97 = vector.load %arg12[%c0_79, %c0_80] : memref<1x128xf32, #tpu.memory_space<vmem>>, vector<1x128xf32>
    %98 = vector.broadcast %97 : vector<1x128xf32> to vector<16x128xf32>
    %99 = arith.addf %96, %98 : vector<16x128xf32>
    %cst_81 = arith.constant 5.000000e-01 : f32
    %100 = vector.broadcast %cst_81 : f32 to vector<16x128xf32>
    %101 = arith.mulf %100, %99 : vector<16x128xf32>
    %cst_82 = arith.constant 0.707106769 : f32
    %102 = vector.broadcast %cst_82 : f32 to vector<16x128xf32>
    %103 = arith.mulf %99, %102 : vector<16x128xf32>
    %104 = math.erf %103 : vector<16x128xf32>
    %cst_83 = arith.constant 1.000000e+00 : f32
    %105 = vector.broadcast %cst_83 : f32 to vector<16x128xf32>
    %106 = arith.addf %105, %104 : vector<16x128xf32>
    %107 = arith.mulf %101, %106 : vector<16x128xf32>
    %c0_84 = arith.constant 0 : index
    %c0_85 = arith.constant 0 : index
    %108 = vector.load %arg13[%c0_84, %c0_85] : memref<128x128xf32, #tpu.memory_space<vmem>>, vector<128x128xf32>
    %cst_86 = arith.constant dense<0.000000e+00> : vector<16x128xf32>
    %109 = tpu.matmul %107, %108, %cst_86 {dimension_numbers = #tpu.dot_dimension_numbers<[1], [0], [0], [1], [0, 0, 1, 1], [], []>} : vector<16x128xf32>, vector<128x128xf32>, vector<16x128xf32> -> vector<16x128xf32>
    %c0_87 = arith.constant 0 : index
    %c0_88 = arith.constant 0 : index
    %110 = vector.load %arg14[%c0_87, %c0_88] : memref<1x128xf32, #tpu.memory_space<vmem>>, vector<1x128xf32>
    %111 = vector.broadcast %110 : vector<1x128xf32> to vector<16x128xf32>
    %112 = arith.addf %109, %111 : vector<16x128xf32>
    %113 = tpu.iota {dimensions = array<i32: 0>} : vector<64x16xi32>
    %114 = vector.broadcast %79 : vector<1x16xi32> to vector<64x16xi32>
    %115 = arith.cmpi eq, %113, %114 : vector<64x16xi32>
    %116 = arith.extui %115 : vector<64x16xi1> to vector<64x16xi32>
    %117 = arith.sitofp %116 : vector<64x16xi32> to vector<64x16xf32>
    %c0_89 = arith.constant 0 : index
    %c0_90 = arith.constant 0 : index
    %118 = vector.load %arg16[%c0_89, %c0_90] : memref<64x128xf32, #tpu.memory_space<vmem>>, vector<64x128xf32>
    %cst_91 = arith.constant dense<0.000000e+00> : vector<64x128xf32>
    %119 = tpu.matmul %117, %112, %cst_91 {dimension_numbers = #tpu.dot_dimension_numbers<[1], [0], [0], [1], [0, 0, 1, 1], [], []>} : vector<64x16xf32>, vector<16x128xf32>, vector<64x128xf32> -> vector<64x128xf32>
    %120 = arith.addf %118, %119 : vector<64x128xf32>
    %c0_92 = arith.constant 0 : index
    %c0_93 = arith.constant 0 : index
    %121 = vector.load %arg16[%c0_92, %c0_93] : memref<64x128xf32, #tpu.memory_space<vmem>>, vector<64x128xf32>
    tpu.vector_store %arg16[%c0_92, %c0_93], %120 {strides = array<i32>} : memref<64x128xf32, #tpu.memory_space<vmem>>, vector<64x128xf32>,
    %c0_94 = arith.constant 0 : index
    %c0_95 = arith.constant 0 : index
    %122 = vector.load %arg15[%c0_94, %c0_95] : memref<64x128xf32, #tpu.memory_space<vmem>>, vector<64x128xf32>
    %c0_96 = arith.constant 0 : index
    %c0_97 = arith.constant 0 : index
    %123 = vector.load %arg16[%c0_96, %c0_97] : memref<64x128xf32, #tpu.memory_space<vmem>>, vector<64x128xf32>
    %124 = arith.addf %122, %123 : vector<64x128xf32>
    %c0_98 = arith.constant 0 : index
    %c0_99 = arith.constant 0 : index
    %125 = vector.load %arg15[%c0_98, %c0_99] : memref<64x128xf32, #tpu.memory_space<vmem>>, vector<64x128xf32>
    tpu.vector_store %arg15[%c0_98, %c0_99], %124 {strides = array<i32>} : memref<64x128xf32, #tpu.memory_space<vmem>>, vector<64x128xf32>,
    %cst_100 = arith.constant 0.000000e+00 : f32
    %126 = vector.broadcast %cst_100 : f32 to vector<64x128xf32>
    %c0_101 = arith.constant 0 : index
    %c0_102 = arith.constant 0 : index
    %127 = vector.load %arg16[%c0_101, %c0_102] : memref<64x128xf32, #tpu.memory_space<vmem>>, vector<64x128xf32>
    tpu.vector_store %arg16[%c0_101, %c0_102], %126 {strides = array<i32>} : memref<64x128xf32, #tpu.memory_space<vmem>>, vector<64x128xf32>,
    %c0_103 = arith.constant 0 : index
    %c0_104 = arith.constant 0 : index
    %128 = vector.load %arg0[%c0_103, %c0_104] : memref<16x1xi32, #tpu.memory_space<vmem>>, vector<16x1xi32>
    %c0_105 = arith.constant 0 : index
    %c0_106 = arith.constant 0 : index
    %129 = vector.load %arg1[%c0_105, %c0_106] : memref<16x1xi32, #tpu.memory_space<vmem>>, vector<16x1xi32>
    %c0_107 = arith.constant 0 : index
    %c0_108 = arith.constant 0 : index
    %130 = vector.load %arg2[%c0_107, %c0_108] : memref<1x16xi32, #tpu.memory_space<vmem>>, vector<1x16xi32>
    %131 = tpu.iota {dimensions = array<i32: 1>} : vector<16x64xi32>
    %132 = vector.broadcast %128 : vector<16x1xi32> to vector<16x64xi32>
    %133 = arith.cmpi eq, %131, %132 : vector<16x64xi32>
    %134 = arith.extui %133 : vector<16x64xi1> to vector<16x64xi32>
    %135 = arith.sitofp %134 : vector<16x64xi32> to vector<16x64xf32>
    %136 = vector.broadcast %129 : vector<16x1xi32> to vector<16x64xi32>
    %137 = arith.cmpi eq, %131, %136 : vector<16x64xi32>
    %138 = arith.extui %137 : vector<16x64xi1> to vector<16x64xi32>
    %139 = arith.sitofp %138 : vector<16x64xi32> to vector<16x64xf32>
    %c0_109 = arith.constant 0 : index
    %c0_110 = arith.constant 0 : index
    %140 = vector.load %arg15[%c0_109, %c0_110] : memref<64x128xf32, #tpu.memory_space<vmem>>, vector<64x128xf32>
    %cst_111 = arith.constant dense<0.000000e+00> : vector<16x128xf32>
    %141 = tpu.matmul %135, %140, %cst_111 {dimension_numbers = #tpu.dot_dimension_numbers<[1], [0], [0], [1], [0, 0, 1, 1], [], []>} : vector<16x64xf32>, vector<64x128xf32>, vector<16x128xf32> -> vector<16x128xf32>
    %cst_112 = arith.constant dense<0.000000e+00> : vector<16x128xf32>
    %142 = tpu.matmul %139, %140, %cst_112 {dimension_numbers = #tpu.dot_dimension_numbers<[1], [0], [0], [1], [0, 0, 1, 1], [], []>} : vector<16x64xf32>, vector<64x128xf32>, vector<16x128xf32> -> vector<16x128xf32>
    %c0_113 = arith.constant 0 : index
    %c0_114 = arith.constant 0 : index
    %143 = vector.load %arg10[%c0_113, %c0_114] : memref<128x128xf32, #tpu.memory_space<vmem>>, vector<128x128xf32>
    %cst_115 = arith.constant dense<0.000000e+00> : vector<16x128xf32>
    %144 = tpu.matmul %141, %143, %cst_115 {dimension_numbers = #tpu.dot_dimension_numbers<[1], [0], [0], [1], [0, 0, 1, 1], [], []>} : vector<16x128xf32>, vector<128x128xf32>, vector<16x128xf32> -> vector<16x128xf32>
    %c0_116 = arith.constant 0 : index
    %c0_117 = arith.constant 0 : index
    %145 = vector.load %arg11[%c0_116, %c0_117] : memref<128x128xf32, #tpu.memory_space<vmem>>, vector<128x128xf32>
    %cst_118 = arith.constant dense<0.000000e+00> : vector<16x128xf32>
    %146 = tpu.matmul %142, %145, %cst_118 {dimension_numbers = #tpu.dot_dimension_numbers<[1], [0], [0], [1], [0, 0, 1, 1], [], []>} : vector<16x128xf32>, vector<128x128xf32>, vector<16x128xf32> -> vector<16x128xf32>
    %147 = arith.addf %144, %146 : vector<16x128xf32>
    %c0_119 = arith.constant 0 : index
    %c0_120 = arith.constant 0 : index
    %148 = vector.load %arg12[%c0_119, %c0_120] : memref<1x128xf32, #tpu.memory_space<vmem>>, vector<1x128xf32>
    %149 = vector.broadcast %148 : vector<1x128xf32> to vector<16x128xf32>
    %150 = arith.addf %147, %149 : vector<16x128xf32>
    %cst_121 = arith.constant 5.000000e-01 : f32
    %151 = vector.broadcast %cst_121 : f32 to vector<16x128xf32>
    %152 = arith.mulf %151, %150 : vector<16x128xf32>
    %cst_122 = arith.constant 0.707106769 : f32
    %153 = vector.broadcast %cst_122 : f32 to vector<16x128xf32>
    %154 = arith.mulf %150, %153 : vector<16x128xf32>
    %155 = math.erf %154 : vector<16x128xf32>
    %cst_123 = arith.constant 1.000000e+00 : f32
    %156 = vector.broadcast %cst_123 : f32 to vector<16x128xf32>
    %157 = arith.addf %156, %155 : vector<16x128xf32>
    %158 = arith.mulf %152, %157 : vector<16x128xf32>
    %c0_124 = arith.constant 0 : index
    %c0_125 = arith.constant 0 : index
    %159 = vector.load %arg13[%c0_124, %c0_125] : memref<128x128xf32, #tpu.memory_space<vmem>>, vector<128x128xf32>
    %cst_126 = arith.constant dense<0.000000e+00> : vector<16x128xf32>
    %160 = tpu.matmul %158, %159, %cst_126 {dimension_numbers = #tpu.dot_dimension_numbers<[1], [0], [0], [1], [0, 0, 1, 1], [], []>} : vector<16x128xf32>, vector<128x128xf32>, vector<16x128xf32> -> vector<16x128xf32>
    %c0_127 = arith.constant 0 : index
    %c0_128 = arith.constant 0 : index
    %161 = vector.load %arg14[%c0_127, %c0_128] : memref<1x128xf32, #tpu.memory_space<vmem>>, vector<1x128xf32>
    %162 = vector.broadcast %161 : vector<1x128xf32> to vector<16x128xf32>
    %163 = arith.addf %160, %162 : vector<16x128xf32>
    %164 = tpu.iota {dimensions = array<i32: 0>} : vector<64x16xi32>
    %165 = vector.broadcast %130 : vector<1x16xi32> to vector<64x16xi32>
    %166 = arith.cmpi eq, %164, %165 : vector<64x16xi32>
    %167 = arith.extui %166 : vector<64x16xi1> to vector<64x16xi32>
    %168 = arith.sitofp %167 : vector<64x16xi32> to vector<64x16xf32>
    %c0_129 = arith.constant 0 : index
    %c0_130 = arith.constant 0 : index
    %169 = vector.load %arg16[%c0_129, %c0_130] : memref<64x128xf32, #tpu.memory_space<vmem>>, vector<64x128xf32>
    %cst_131 = arith.constant dense<0.000000e+00> : vector<64x128xf32>
    %170 = tpu.matmul %168, %163, %cst_131 {dimension_numbers = #tpu.dot_dimension_numbers<[1], [0], [0], [1], [0, 0, 1, 1], [], []>} : vector<64x16xf32>, vector<16x128xf32>, vector<64x128xf32> -> vector<64x128xf32>
    %171 = arith.addf %169, %170 : vector<64x128xf32>
    %c0_132 = arith.constant 0 : index
    %c0_133 = arith.constant 0 : index
    %172 = vector.load %arg16[%c0_132, %c0_133] : memref<64x128xf32, #tpu.memory_space<vmem>>, vector<64x128xf32>
    tpu.vector_store %arg16[%c0_132, %c0_133], %171 {strides = array<i32>} : memref<64x128xf32, #tpu.memory_space<vmem>>, vector<64x128xf32>,
    %c0_134 = arith.constant 0 : index
    %c0_135 = arith.constant 0 : index
    %173 = vector.load %arg15[%c0_134, %c0_135] : memref<64x128xf32, #tpu.memory_space<vmem>>, vector<64x128xf32>
    %c0_136 = arith.constant 0 : index
    %c0_137 = arith.constant 0 : index
    %174 = vector.load %arg16[%c0_136, %c0_137] : memref<64x128xf32, #tpu.memory_space<vmem>>, vector<64x128xf32>
    %175 = arith.addf %173, %174 : vector<64x128xf32>
    %c0_138 = arith.constant 0 : index
    %c0_139 = arith.constant 0 : index
    %176 = vector.load %arg15[%c0_138, %c0_139] : memref<64x128xf32, #tpu.memory_space<vmem>>, vector<64x128xf32>
    tpu.vector_store %arg15[%c0_138, %c0_139], %175 {strides = array<i32>} : memref<64x128xf32, #tpu.memory_space<vmem>>, vector<64x128xf32>,
    return
  }
}

</mosaic_0001>

<bundles_post_ra>
// kernel: tpu_custom_call.1
= control target key start
LH: loop header
LB: loop body
LE: loop exit
PB: predicated region body
PF: predicated region fallthrough
CT: control target
= control target key end

     0   :  { %s5205_s0 = inlined_call_operand.vmem [shape: s32[16,1], index: 0, kind: input, shape index: {}]   ;;  %s5206_s1 = inlined_call_operand.vmem [shape: s32[16,1], index: 1, kind: input, shape index: {}]   ;;  %s5207_s2 = inlined_call_operand.hbm [shape: s32[1,16], index: 2, kind: input, shape index: {}]   ;;  %s5208_s3 = inlined_call_operand.hbm [shape: f32[64,128], index: 3, kind: input, shape index: {}]   ;;  %s5209_s4 = inlined_call_operand.vmem [shape: f32[64,8], index: 4, kind: input, shape index: {}]   ;;  %s5210_s5 = inlined_call_operand.hbm [shape: f32[128,128], index: 5, kind: input, shape index: {}]   ;;  %s5211_s6 = inlined_call_operand.vmem [shape: f32[8,128], index: 6, kind: input, shape index: {}]   ;;  %s5212_s7 = inlined_call_operand.hbm [shape: f32[1,128], index: 7, kind: input, shape index: {}]   ;;  %s5213_s8 = inlined_call_operand.vmem [shape: f32[128,128], index: 8, kind: input, shape index: {}]   ;;  %s5214_s9 = inlined_call_operand.vmem [shape: f32[1,128], index: 9, kind: input, shape index: {}]   ;;  %s5215_s10 = inlined_call_operand.hbm [shape: f32[128,128], index: 10, kind: input, shape index: {}]   ;;  %s5216_s11 = inlined_call_operand.hbm [shape: f32[128,128], index: 11, kind: input, shape index: {}]   ;;  %s5217_s12 = inlined_call_operand.vmem [shape: f32[1,128], index: 12, kind: input, shape index: {}]   ;;  %s5218_s13 = inlined_call_operand.hbm [shape: f32[128,128], index: 13, kind: input, shape index: {}]   ;;  %s5219_s14 = inlined_call_operand.vmem [shape: f32[1,128], index: 14, kind: input, shape index: {}]   ;;  %s5220_s15 = inlined_call_operand.hbm [shape: f32[64,128], index: 15, kind: output, shape index: {}]  }
   0x1   :  { %5222 = sst [smem:[#allocation21_spill]] %s5220_s15 }
   0x2   :  { %20 = vsyncpa [#allocation4], 0 }
   0x3   :  { %21 = vsyncpa [#allocation7], 0 }
   0x4   :  { %22 = vsyncpa [#allocation10], 0 }
   0x5   :  { %23 = vsyncpa [#allocation13], 0 }
   0x6   :  { %24 = vsyncpa [#allocation5], 0  ;;  %s4472_s18 = smov [#allocation6]   ;;  %s4286_s22 = scalar_lea.hbm %s5208_s3, 1024 }
   0x7   :  { %s44_s19 = sshll.u32 %s4472_s18, 4  ;;  %p4287_p0 = scmp.ne.s32.totalorder %s5208_s3, %s4286_s22  ;;  %s45_s19 = int_to_ptr.vmem [resolvable:$true] %s44_s19 }
   0x8   :  { %p4290_p1 = scmp.lt.u32.totalorder %s4286_s22, %s5208_s3 }
   0xa   :  { %p4292_p2 = pnand %p4290_p1, %p4287_p0 }
   0xc   :  { %4295 = shalt.err (!%p4292_p2)
}
   0xd   :  { %s4296_s27 = scalar_lea.vmem %s45_s19, 1024  ;;  %p4301_p4 = scmp.lt.s32.totalorder %s45_s19, %s45_s19 }
   0xe   :  { %p4297_p3 = scmp.ne.s32.totalorder %s45_s19, %s4296_s27  ;;  %p4302_p5 = scmp.lt.s32.totalorder %s4296_s27, %s4296_s27 }
  0x10   :  { %p4303_p6 = por %p4302_p5, %p4301_p4 }
  0x12   :  { %p4304_p7 = pnand %p4303_p6, %p4297_p3 }
  0x14   :  { %4307 = shalt.err (!%p4304_p7)
}
  0x15   :  { %s4473_s28 = smov 128   ;;  %s4474_s29 = smov 8  }
  0x16   :  { %50 = dma.hbm_to_vmem [thread:$0]  %s5208_s3, 1024, %s45_s19, [#allocation7], %s4473_s28, %s4473_s28, %s4474_s29  }
  0x17   :  { %s4475_s17 = smov [#allocation9]   ;;  %s4476_s20 = smov [#allocation12]  }
  0x18   :  { %s73_s18 = sshll.u32 %s4475_s17, 4  ;;  %s98_s21 = sshll.u32 %s4476_s20, 4  ;;  %s74_s18 = int_to_ptr.vmem [resolvable:$true] %s73_s18  ;;  %s99_s21 = int_to_ptr.vmem [resolvable:$true] %s98_s21 }
  0x19   :  { %s4308_s24 = scalar_lea.hbm %s5212_s7, 16 }
  0x1a   :  { %p4309_p8 = scmp.ne.s32.totalorder %s5212_s7, %s4308_s24  ;;  %p4312_p9 = scmp.lt.u32.totalorder %s4308_s24, %s5212_s7 }
  0x1c   :  { %p4314_p10 = pnand %p4312_p9, %p4309_p8 }
  0x1e   :  { %4317 = shalt.err (!%p4314_p10)
}
  0x1f   :  { %s4318_s3 = scalar_lea.vmem %s74_s18, 16  ;;  %s4322_s19 = scalar_lea.vmem %s74_s18, 32 }
  0x20   :  { %p4319_p11 = scmp.ne.s32.totalorder %s74_s18, %s4318_s3  ;;  %p4323_p12 = scmp.lt.s32.totalorder %s74_s18, %s74_s18 }
  0x21   :  { %p4324_p13 = scmp.lt.s32.totalorder %s4322_s19, %s4318_s3 }
  0x23   :  { %p4325_p0 = por %p4324_p13, %p4323_p12 }
  0x25   :  { %p4326_p1 = pnand %p4325_p0, %p4319_p11 }
  0x27   :  { %4329 = shalt.err (!%p4326_p1)
}
  0x28   :  { %76 = dma.hbm_to_vmem [thread:$0]  %s5212_s7, 16, %s74_s18, [#allocation10]  }
  0x29   :  { %s4330_s15 = scalar_lea.hbm %s5216_s11, 2048 }
  0x2a   :  { %p4331_p2 = scmp.ne.s32.totalorder %s5216_s11, %s4330_s15  ;;  %p4334_p3 = scmp.lt.u32.totalorder %s4330_s15, %s5216_s11 }
  0x2c   :  { %p4336_p4 = pnand %p4334_p3, %p4331_p2 }
  0x2e   :  { %4339 = shalt.err (!%p4336_p4)
}
  0x2f   :  { %s4340_s26 = scalar_lea.vmem %s99_s21, 2048  ;;  %p4345_p6 = scmp.lt.s32.totalorder %s99_s21, %s99_s21 }
  0x30   :  { %p4341_p5 = scmp.ne.s32.totalorder %s99_s21, %s4340_s26  ;;  %p4346_p7 = scmp.lt.s32.totalorder %s4340_s26, %s4340_s26 }
  0x32   :  { %p4347_p8 = por %p4346_p7, %p4345_p6 }
  0x34   :  { %p4348_p9 = pnand %p4347_p8, %p4341_p5 }
  0x36   :  { %4351 = shalt.err (!%p4348_p9)
}
  0x37   :  { %104 = dma.hbm_to_vmem [thread:$0]  %s5216_s11, 2048, %s99_s21, [#allocation13], %s4473_s28, %s4473_s28, %s4474_s29  }
  0x38   :  { %s4477_s27 = smov [#allocation3]   ;;  %s4478_s19 = smov [#allocation8]  }
  0x39   :  { %s35_s3 = sshll.u32 %s4477_s27, 4  ;;  %s58_s30 = sshll.u32 %s4478_s19, 4  ;;  %s36_s3 = int_to_ptr.vmem [resolvable:$true] %s35_s3  ;;  %s59_s30 = int_to_ptr.vmem [resolvable:$true] %s58_s30 }
  0x3a   :  { %s4352_s20 = scalar_lea.hbm %s5207_s2, 16 }
  0x3b   :  { %p4353_p10 = scmp.ne.s32.totalorder %s5207_s2, %s4352_s20  ;;  %p4356_p11 = scmp.lt.u32.totalorder %s4352_s20, %s5207_s2 }
  0x3d   :  { %p4358_p12 = pnand %p4356_p11, %p4353_p10 }
  0x3f   :  { %4361 = shalt.err (!%p4358_p12)
}
  0x40   :  { %s4362_s11 = scalar_lea.vmem %s36_s3, 16  ;;  %s4366_s21 = scalar_lea.vmem %s36_s3, 32 }
  0x41   :  { %p4363_p13 = scmp.ne.s32.totalorder %s36_s3, %s4362_s11  ;;  %p4367_p0 = scmp.lt.s32.totalorder %s36_s3, %s36_s3 }
  0x42   :  { %p4368_p1 = scmp.lt.s32.totalorder %s4366_s21, %s4362_s11 }
  0x44   :  { %p4369_p2 = por %p4368_p1, %p4367_p0 }
  0x46   :  { %p4370_p3 = pnand %p4369_p2, %p4363_p13 }
  0x48   :  { %4373 = shalt.err (!%p4370_p3)
}
  0x49   :  { %38 = dma.hbm_to_vmem [thread:$0]  %s5207_s2, 16, %s36_s3, [#allocation4]  }
  0x4a   :  { %s4374_s27 = scalar_lea.hbm %s5210_s5, 2048 }
  0x4b   :  { %p4375_p4 = scmp.ne.s32.totalorder %s5210_s5, %s4374_s27  ;;  %p4378_p5 = scmp.lt.u32.totalorder %s4374_s27, %s5210_s5 }
  0x4d   :  { %p4380_p6 = pnand %p4378_p5, %p4375_p4 }
  0x4f   :  { %4383 = shalt.err (!%p4380_p6)
}
  0x50   :  { %s4384_s15 = scalar_lea.vmem %s59_s30, 2048  ;;  %p4389_p8 = scmp.lt.s32.totalorder %s59_s30, %s59_s30 }
  0x51   :  { %p4385_p7 = scmp.ne.s32.totalorder %s59_s30, %s4384_s15  ;;  %p4390_p9 = scmp.lt.s32.totalorder %s4384_s15, %s4384_s15 }
  0x53   :  { %p4391_p10 = por %p4390_p9, %p4389_p8 }
  0x55   :  { %p4392_p11 = pnand %p4391_p10, %p4385_p7 }
  0x57   :  { %4395 = shalt.err (!%p4392_p11)
}
  0x58   :  { %64 = dma.hbm_to_vmem [thread:$0]  %s5210_s5, 2048, %s59_s30, [#allocation7], %s4473_s28, %s4473_s28, %s4474_s29  }
  0x59   :  { %s4479_s22 = smov [#allocation11]   ;;  %s4480_s24 = smov [#allocation14]  }
  0x5a   :  { %s86_s23 = sshll.u32 %s4479_s22, 4  ;;  %s112_s11 = sshll.u32 %s4480_s24, 4  ;;  %s87_s23 = int_to_ptr.vmem [resolvable:$true] %s86_s23  ;;  %s113_s11 = int_to_ptr.vmem [resolvable:$true] %s112_s11 }
  0x5b   :  { %s4396_s26 = scalar_lea.hbm %s5215_s10, 2048 }
  0x5c   :  { %p4397_p12 = scmp.ne.s32.totalorder %s5215_s10, %s4396_s26  ;;  %p4400_p13 = scmp.lt.u32.totalorder %s4396_s26, %s5215_s10 }
  0x5e   :  { %p4402_p0 = pnand %p4400_p13, %p4397_p12 }
  0x60   :  { %4405 = shalt.err (!%p4402_p0)
}
  0x61   :  { %s4406_s5 = scalar_lea.vmem %s87_s23, 2048  ;;  %p4411_p2 = scmp.lt.s32.totalorder %s87_s23, %s87_s23 }
  0x62   :  { %p4407_p1 = scmp.ne.s32.totalorder %s87_s23, %s4406_s5  ;;  %p4412_p3 = scmp.lt.s32.totalorder %s4406_s5, %s4406_s5 }
  0x64   :  { %p4413_p4 = por %p4412_p3, %p4411_p2 }
  0x66   :  { %p4414_p5 = pnand %p4413_p4, %p4407_p1 }
  0x68   :  { %4417 = shalt.err (!%p4414_p5)
}
  0x69   :  { %92 = dma.hbm_to_vmem [thread:$0]  %s5215_s10, 2048, %s87_s23, [#allocation10], %s4473_s28, %s4473_s28, %s4474_s29  }
  0x6a   :  { %s4418_s15 = scalar_lea.hbm %s5218_s13, 2048 }
  0x6b   :  { %p4419_p6 = scmp.ne.s32.totalorder %s5218_s13, %s4418_s15  ;;  %p4422_p7 = scmp.lt.u32.totalorder %s4418_s15, %s5218_s13 }
  0x6d   :  { %p4424_p8 = pnand %p4422_p7, %p4419_p6 }
  0x6f   :  { %4427 = shalt.err (!%p4424_p8)
}
  0x70   :  { %s4428_s21 = scalar_lea.vmem %s113_s11, 2048  ;;  %p4433_p10 = scmp.lt.s32.totalorder %s113_s11, %s113_s11 }
  0x71   :  { %p4429_p9 = scmp.ne.s32.totalorder %s113_s11, %s4428_s21  ;;  %p4434_p11 = scmp.lt.s32.totalorder %s4428_s21, %s4428_s21 }
  0x73   :  { %p4435_p12 = por %p4434_p11, %p4433_p10 }
  0x75   :  { %p4436_p13 = pnand %p4435_p12, %p4429_p9 }
  0x77   :  { %4439 = shalt.err (!%p4436_p13)
}
  0x78   :  { %118 = dma.hbm_to_vmem [thread:$0]  %s5218_s13, 2048, %s113_s11, [#allocation13], %s4473_s28, %s4473_s28, %s4474_s29  }
  0x79   :  { %4462 = dma.done.wait [#allocation4], 16  }
  0x7a   :  { %4463 = vsyncadd [#allocation4], 4294967280 }
  0x7b   :  { %4464 = dma.done.wait [#allocation7], 3072  }
  0x7c   :  { %4465 = vsyncadd [#allocation7], 4294964224 }
  0x7d   :  { %4466 = dma.done.wait [#allocation10], 2064  }
  0x7e   :  { %4467 = vsyncadd [#allocation10], 4294965232 }
  0x7f   :  { %4468 = dma.done.wait [#allocation13], 4096  }
  0x80   :  { %4469 = vsyncadd [#allocation13], 4294963200  ;;  %vm175_vm0 = vcmask 64512   ;;  %v174_v0 = vld [vmem:[%s5211_s6] sm:$0xff]  ;;  %v151_v3 = vld [vmem:[#allocation8 + $0x8] sm:$0xff]  ;;  %vm648_vm2 = vcmask 523264  }
  0x81   :  { %v166_v1 = vld [vmem:[%s5209_s4] sm:$0xff]  ;;  %3191 = vmatprep.subr.mxu0 %v174_v0  ;;  %v167_v4 = vld [vmem:[%s5209_s4 + $0x8] sm:$0xff]  ;;  %v152_v5 = vld [vmem:[#allocation8 + $0x10] sm:$0xff]  ;;  %vm1155_vm7 = vcmask 130048  }
  0x82   :  { %v150_v2 = vld [vmem:[#allocation8] sm:$0xff]  ;;  %3193 = vmatprep.mubr.msk.f32.mxu0 %vm175_vm0, %v166_v1  ;;  %3192 = vmatpush3.msra.mxu0 %v174_v0  ;;  %v153_v7 = vld [vmem:[#allocation8 + $0x18] sm:$0xff]  ;;  %v155_v10 = vld [vmem:[#allocation8 + $0x28] sm:$0xff] }
  0x83   :  { %v3770_v6 = vpack.c.bf16 %v151_v3, %v150_v2  ;;  %3194 = vmatmul.mubr.msk.f32.vlgmr.msra.gmra.mrb[0].mxu0 %vm175_vm0, %v167_v4  ;;  %v3774_v8 = vpack.c.bf16 %v153_v7, %v152_v5  ;;  %v154_v9 = vld [vmem:[#allocation8 + $0x20] sm:$0xff]  ;;  %v168_v11 = vld [vmem:[%s5209_s4 + $0x10] sm:$0xff]  ;;  %v169_v12 = vld [vmem:[%s5209_s4 + $0x18] sm:$0xff]  ;;  %v4481_v2 = vmov 0  }
  0x84   :  { %3196 = vmatprep.mubr.msk.f32.mxu0 %vm175_vm0, %v168_v11  ;;  %v170_v13 = vld [vmem:[%s5209_s4 + $0x20] sm:$0xff]  ;;  %v3778_v14 = vpack.c.bf16 %v155_v10, %v154_v9  ;;  %v156_v15 = vld [vmem:[#allocation8 + $0x30] sm:$0xff]  ;;  %v171_v17 = vld [vmem:[%s5209_s4 + $0x28] sm:$0xff]  ;;  %4256 = vset.pattern.permute.xlu0 %v4481_v2 }
  0x85   :  { %3771 = vmatprep.subr.bf16.mxu0 %v3770_v6  ;;  %v157_v16 = vld [vmem:[#allocation8 + $0x38] sm:$0xff]  ;;  %v172_v18 = vld [vmem:[%s5209_s4 + $0x30] sm:$0xff]  ;;  %v158_v20 = vld [vmem:[#allocation8 + $0x40] sm:$0xff]  ;;  %4257 = vset.pattern.permute.xlu1 %v4481_v2  ;;  %v4482_v2 = vmov 0.0  }
  0x86   :  { %3773 = vmatpush3.bf16.msra.mxu0 %v3770_v6  ;;  %v3782_v19 = vpack.c.bf16 %v157_v16, %v156_v15  ;;  %v159_v21 = vld [vmem:[#allocation8 + $0x48] sm:$0xff]  ;;  %v465_v22 = vld [vmem:[%s5213_s8] sm:$0xff]  ;;  %v173_v25 = vld [vmem:[%s5209_s4 + $0x38] sm:$0xff] }
  0x87   :  { %3775 = vmatprep.subr.bf16.mxu0 %v3774_v8  ;;  %3197 = vmatmul.mubr.msk.f32.gmra.mrb[2].mxu0 %vm175_vm0, %v169_v12  ;;  %v466_v23 = vld [vmem:[%s5213_s8 + $0x8] sm:$0xff]  ;;  %v467_v24 = vld [vmem:[%s5213_s8 + $0x10] sm:$0xff]  ;;  %v468_v27 = vld [vmem:[%s5213_s8 + $0x18] sm:$0xff]  ;;  %v3786_v32 = vpack.c.bf16 %v159_v21, %v158_v20 }
  0x88   :  { %3199 = vmatprep.mubr.msk.f32.mxu0 %vm175_vm0, %v170_v13  ;;  %v3802_v26 = vpack.c.bf16 %v466_v23, %v465_v22  ;;  %v142_v28 = vld [vmem:[#allocation6] sm:$0xff]  ;;  %v3806_v29 = vpack.c.bf16 %v468_v27, %v467_v24  ;;  %v160_v33 = vld [vmem:[#allocation8 + $0x50] sm:$0xff]  ;;  %v161_v34 = vld [vmem:[#allocation8 + $0x58] sm:$0xff] }
  0x89   :  { %v469_v30 = vld [vmem:[%s5213_s8 + $0x20] sm:$0xff]  ;;  %v470_v31 = vld [vmem:[%s5213_s8 + $0x28] sm:$0xff]  ;;  %v3790_v36 = vpack.c.bf16 %v161_v34, %v160_v33  ;;  %v164_v40 = vld [vmem:[#allocation8 + $0x70] sm:$0xff] }
  0x8a   :  { %3777 = vmatpush3.bf16.msra.mxu0 %v3774_v8  ;;  %3803 = vmatprep.subr.bf16.mxu1 %v3802_v26  ;;  %v3810_v35 = vpack.c.bf16 %v470_v31, %v469_v30  ;;  %v162_v37 = vld [vmem:[#allocation8 + $0x60] sm:$0xff]  ;;  %v163_v38 = vld [vmem:[#allocation8 + $0x68] sm:$0xff]  ;;  %v165_v41 = vld [vmem:[#allocation8 + $0x78] sm:$0xff] }
  0x8b   :  { %3779 = vmatprep.subr.bf16.mxu0 %v3778_v14  ;;  %3200 = vmatmul.mubr.msk.f32.gmra.mrb[4].mxu0 %vm175_vm0, %v171_v17  ;;  %v3794_v39 = vpack.c.bf16 %v163_v38, %v162_v37  ;;  %v3798_v42 = vpack.c.bf16 %v165_v41, %v164_v40  ;;  %v143_v43 = vld [vmem:[#allocation6 + $0x8] sm:$0xff]  ;;  %v144_v44 = vld [vmem:[#allocation6 + $0x10] sm:$0xff]  ;;  %v145_v45 = vld [vmem:[#allocation6 + $0x18] sm:$0xff] }
  0x8c   :  { %3202 = vmatprep.mubr.msk.f32.mxu0 %vm175_vm0, %v172_v18  ;;  %3805 = vmatpush3.bf16.msra.mxu1 %v3802_v26  ;;  %v146_v46 = vld [vmem:[#allocation6 + $0x20] sm:$0xff]  ;;  %v147_v47 = vld [vmem:[#allocation6 + $0x28] sm:$0xff]  ;;  %v148_v48 = vld [vmem:[#allocation6 + $0x30] sm:$0xff] }
  0x8d   :  { %3807 = vmatprep.subr.bf16.mxu1 %v3806_v29  ;;  %v149_v49 = vld [vmem:[#allocation6 + $0x38] sm:$0xff]  ;;  %v471_v50 = vld [vmem:[%s5213_s8 + $0x30] sm:$0xff]  ;;  %v474_v54 = vld [vmem:[%s5213_s8 + $0x48] sm:$0xff] }
  0x8e   :  { %3781 = vmatpush3.bf16.msra.mxu0 %v3778_v14  ;;  %v472_v51 = vld [vmem:[%s5213_s8 + $0x38] sm:$0xff]  ;;  %v473_v53 = vld [vmem:[%s5213_s8 + $0x40] sm:$0xff]  ;;  %v475_v56 = vld [vmem:[%s5213_s8 + $0x50] sm:$0xff] }
  0x8f   :  { %3783 = vmatprep.subr.bf16.mxu0 %v3782_v19  ;;  %3203 = vmatmul.mubr.msk.f32.gmra.mrb[6].mxu0 %vm175_vm0, %v173_v25  ;;  %v3814_v52 = vpack.c.bf16 %v472_v51, %v471_v50  ;;  %v3818_v55 = vpack.c.bf16 %v474_v54, %v473_v53  ;;  %v476_v57 = vld [vmem:[%s5213_s8 + $0x58] sm:$0xff]  ;;  %v477_v59 = vld [vmem:[%s5213_s8 + $0x60] sm:$0xff]  ;;  %v478_v60 = vld [vmem:[%s5213_s8 + $0x68] sm:$0xff] }
  0x90   :  { %3237 = vmatprep.mubr.f32.mxu0 %v142_v28  ;;  %3809 = vmatpush3.bf16.msra.mxu1 %v3806_v29  ;;  %v3822_v58 = vpack.c.bf16 %v476_v57, %v475_v56  ;;  %v3826_v61 = vpack.c.bf16 %v478_v60, %v477_v59  ;;  %v479_v62 = vld [vmem:[%s5213_s8 + $0x70] sm:$0xff]  ;;  %v480_v63 = vld [vmem:[%s5213_s8 + $0x78] sm:$0xff]  ;;  %v611_v1 = vld [vmem:[%s5206_s1] sm:$0xff] }
  0x91   :  { %3811 = vmatprep.subr.bf16.mxu1 %v3810_v35  ;;  %v3830_v0 = vpack.c.bf16 %v480_v63, %v479_v62  ;;  %v1341_v3 = vld [vmem:[%s5205_s0] sm:$0xff]  ;;  %629 = vperm.xlu0 %4256, %v611_v1   ;;  %v612_v4 = vld [vmem:[%s5206_s1 + $0x8] sm:$0xff]  ;;  %v614_v63 = vlaneseq }
  0x92   :  { %3785 = vmatpush3.bf16.msra.mxu0 %v3782_v19  ;;  %617 = vperm.xlu1 %4257, %v1341_v3   ;;  %v610_v5 = vld [vmem:[%s5205_s0 + $0x8] sm:$0xff]  ;;  %v2799_v6 = vld [vmem:[#allocation9] ss:$0 sm:$0xff] }
  0x93   :  { %3787 = vmatprep.subr.bf16.mxu0 %v3786_v32 }
  0x94   :  { %3813 = vmatpush3.bf16.msra.mxu1 %v3810_v35 }
  0x95   :  { %3815 = vmatprep.subr.bf16.mxu1 %v3814_v52  ;;  %632 = vperm.xlu0 %4256, %v612_v4  }
  0x96   :  { %3789 = vmatpush3.bf16.msra.mxu0 %v3786_v32  ;;  %620 = vperm.xlu1 %4257, %v610_v5  }
  0x97   :  { %3791 = vmatprep.subr.bf16.mxu0 %v3790_v36 }
  0x98   :  { %3817 = vmatpush3.bf16.msra.mxu1 %v3814_v52 }
  0x99   :  { %3819 = vmatprep.subr.bf16.mxu1 %v3818_v55  ;;  %1347 = vperm.xlu0 %4256, %v1341_v3  }
  0x9a   :  { %3793 = vmatpush3.bf16.msra.mxu0 %v3790_v36  ;;  %1350 = vperm.xlu1 %4257, %v610_v5  }
  0x9b   :  { %3795 = vmatprep.subr.bf16.mxu0 %v3794_v39 }
  0x9c   :  { %3821 = vmatpush3.bf16.msra.mxu1 %v3818_v55 }
  0x9d   :  { %3823 = vmatprep.subr.bf16.mxu1 %v3822_v58  ;;  %1359 = vperm.xlu0 %4256, %v611_v1  }
  0x9e   :  { %3797 = vmatpush3.bf16.msra.mxu0 %v3794_v39  ;;  %1362 = vperm.xlu1 %4257, %v612_v4  }
  0x9f   :  { %3799 = vmatprep.subr.bf16.mxu0 %v3798_v42 }
  0xa0   :  { %3825 = vmatpush3.bf16.msra.mxu1 %v3822_v58 }
  0xa1   :  { %3827 = vmatprep.subr.bf16.mxu1 %v3826_v61  ;;  %2066 = vperm.xlu0 %4256, %v1341_v3  }
  0xa2   :  { %3801 = vmatpush3.bf16.msra.mxu0 %v3798_v42  ;;  %2069 = vperm.xlu1 %4257, %v610_v5  }
  0xa4   :  { %3829 = vmatpush3.bf16.msra.mxu1 %v3826_v61 }
  0xa5   :  { %3238 = vmatmul.mubr.f32.vlgmr.msra.gmra.mrb[0].mxu0 %v143_v43  ;;  %3831 = vmatprep.subr.bf16.mxu1 %v3830_v0 }
  0xa6   :  { %3240 = vmatprep.mubr.f32.mxu0 %v144_v44  ;;  %2078 = vperm.xlu0 %4256, %v611_v1  }
  0xa7   :  { %2081 = vperm.xlu1 %4257, %v612_v4  }
  0xa8   :  { %3833 = vmatpush3.bf16.msra.mxu1 %v3830_v0  ;;  %v4759_v0 = vand.u32 127, %v614_v63 }
  0xa9   :  { %3241 = vmatmul.mubr.f32.gmra.mrb[2].mxu0 %v145_v45 }
  0xaa   :  { %3243 = vmatprep.mubr.f32.mxu0 %v146_v46 }
  0xad   :  { %3244 = vmatmul.mubr.f32.gmra.mrb[4].mxu0 %v147_v47 }
  0xae   :  { %3246 = vmatprep.mubr.f32.mxu0 %v148_v48 }
  0xb1   :  { %3247 = vmatmul.mubr.f32.gmra.mrb[6].mxu0 %v149_v49 }
 0x110   :  { %v630_v1 = vpop.permute.xlu0 %629 }
 0x111   :  { %vm634_vm1 = vcmp.eq.s32.totalorder %v4759_v0, %v630_v1  ;;  %v618_v4 = vpop.permute.xlu1 %617 }
 0x112   :  { %v2803_v3 = vsel %vm634_vm1, 1.0, %v4482_v2  ;;  %vm622_vm3 = vcmp.eq.s32.totalorder %v4759_v0, %v618_v4  ;;  %v1017_v4 = vld [vmem:[#allocation14 + $0x28] sm:$0xff] }
 0x113   :  { %3328 = vmatprep.mubr.msk.f32.mxu0 %vm648_vm2, %v2803_v3  ;;  %v2801_v5 = vsel %vm622_vm3, 1.0, %v4482_v2  ;;  %v1016_v3 = vld [vmem:[#allocation14 + $0x20] sm:$0xff] }
 0x178   :  { %v3239_v7 = vpop.f32.mrb[0].mxu0 }
 0x179   :  { %v418_v8 = vadd.f32 %v3239_v7, %v2799_v6  ;;  %v371_v9 = vpop.f32.mrb[1].mxu0 }
 0x17a   :  { %v417_v10 = vadd.f32 %v2799_v6, %v371_v9 }
 0x17b   :  { %v434_v11 = vmul.f32 0.70710677, %v418_v8  ;;  %v426_v36 = vmul.f32 0.5, %v418_v8 }
 0x17c   :  { %v433_v12 = vmul.f32 0.70710677, %v417_v10  ;;  %v3242_v13 = vpop.f32.mrb[2].mxu0  ;;  %v425_v34 = vmul.f32 0.5, %v417_v10 }
 0x17d   :  { %4258 = verf.f32 %v434_v11  ;;  %v420_v14 = vadd.f32 %v3242_v13, %v2799_v6  ;;  %v381_v15 = vpop.f32.mrb[3].mxu0 }
 0x17e   :  { %4260 = verf.f32 %v433_v12  ;;  %v419_v16 = vadd.f32 %v2799_v6, %v381_v15 }
 0x17f   :  { %v436_v17 = vmul.f32 0.70710677, %v420_v14  ;;  %v428_v44 = vmul.f32 0.5, %v420_v14 }
 0x180   :  { %v435_v18 = vmul.f32 0.70710677, %v419_v16  ;;  %v3245_v19 = vpop.f32.mrb[4].mxu0  ;;  %v427_v42 = vmul.f32 0.5, %v419_v16 }
 0x181   :  { %4262 = verf.f32 %v436_v17  ;;  %v422_v20 = vadd.f32 %v3245_v19, %v2799_v6  ;;  %v391_v21 = vpop.f32.mrb[5].mxu0 }
 0x182   :  { %4264 = verf.f32 %v435_v18  ;;  %v421_v22 = vadd.f32 %v2799_v6, %v391_v21 }
 0x183   :  { %v438_v23 = vmul.f32 0.70710677, %v422_v20  ;;  %v430_v52 = vmul.f32 0.5, %v422_v20 }
 0x184   :  { %v437_v24 = vmul.f32 0.70710677, %v421_v22  ;;  %v3248_v25 = vpop.f32.mrb[6].mxu0  ;;  %v429_v50 = vmul.f32 0.5, %v421_v22 }
 0x185   :  { %4266 = verf.f32 %v438_v23  ;;  %v424_v26 = vadd.f32 %v3248_v25, %v2799_v6  ;;  %v401_v27 = vpop.f32.mrb[7].mxu0  ;;  %v827_v25 = vld [vmem:[#allocation12] sm:$0xff] }
 0x186   :  { %4268 = verf.f32 %v437_v24  ;;  %v423_v28 = vadd.f32 %v2799_v6, %v401_v27  ;;  %v2800_v6 = vld [vmem:[%s5214_s9] ss:$0 sm:$0xff] }
 0x187   :  { %v4259_v29 = vpop.eup %4258  ;;  %v440_v30 = vmul.f32 0.70710677, %v424_v26  ;;  %v432_v60 = vmul.f32 0.5, %v424_v26  ;;  %v828_v26 = vld [vmem:[#allocation12 + $0x8] sm:$0xff] }
 0x188   :  { %v4261_v31 = vpop.eup %4260  ;;  %v450_v32 = vadd.f32 1.0, %v4259_v29  ;;  %v439_v33 = vmul.f32 0.70710677, %v423_v28  ;;  %v431_v58 = vmul.f32 0.5, %v423_v28  ;;  %v621_v28 = vpop.permute.xlu1 %620 }
 0x189   :  { %4270 = verf.f32 %v440_v30  ;;  %v449_v35 = vadd.f32 1.0, %v4261_v31  ;;  %vm623_vm4 = vcmp.eq.s32.totalorder %v4759_v0, %v621_v28  ;;  %v4795_v30 = vpack.c.bf16 %v828_v26, %v827_v25  ;;  %v633_v31 = vpop.permute.xlu0 %632  ;;  %v819_v26 = vld [vmem:[#allocation11 + $0x40] sm:$0xff]  ;;  %v820_v28 = vld [vmem:[#allocation11 + $0x48] sm:$0xff] }
 0x18a   :  { %4272 = verf.f32 %v439_v33  ;;  %v458_v41 = vmul.f32 %v450_v32, %v426_v36  ;;  %v829_v32 = vld [vmem:[#allocation12 + $0x10] sm:$0xff]  ;;  %v830_v33 = vld [vmem:[#allocation12 + $0x18] sm:$0xff]  ;;  %vm635_vm5 = vcmp.eq.s32.totalorder %v4759_v0, %v633_v31 }
 0x18b   :  { %v4263_v37 = vpop.eup %4262  ;;  %v457_v38 = vmul.f32 %v449_v35, %v425_v34  ;;  %v2802_v34 = vsel %vm623_vm4, 1.0, %v4482_v2  ;;  %v4800_v35 = vpack.c.bf16 %v830_v33, %v829_v32  ;;  %v2804_v36 = vsel %vm635_vm5, 1.0, %v4482_v2  ;;  %v821_v31 = vld [vmem:[#allocation11 + $0x50] sm:$0xff]  ;;  %v822_v32 = vld [vmem:[#allocation11 + $0x58] sm:$0xff] }
 0x18c   :  { %v4265_v39 = vpop.eup %4264  ;;  %v452_v40 = vadd.f32 1.0, %v4263_v37  ;;  %v831_v37 = vld [vmem:[#allocation12 + $0x20] sm:$0xff]  ;;  %v4863_v33 = vpack.c.bf16 %v822_v32, %v821_v31 }
 0x18d   :  { %v451_v43 = vadd.f32 1.0, %v4265_v39  ;;  %3281 = vmatprep.mubr.f32.mxu1 %v457_v38  ;;  %v832_v38 = vld [vmem:[#allocation12 + $0x28] sm:$0xff] }
 0x18e   :  { %3282 = vmatmul.mubr.f32.vlgmr.msra.gmra.mrb[0].mxu1 %v458_v41  ;;  %v460_v49 = vmul.f32 %v452_v40, %v428_v44  ;;  %v4807_v39 = vpack.c.bf16 %v832_v38, %v831_v37  ;;  %v833_v40 = vld [vmem:[#allocation12 + $0x30] sm:$0xff]  ;;  %v834_v41 = vld [vmem:[#allocation12 + $0x38] sm:$0xff]  ;;  %v836_v44 = vld [vmem:[#allocation12 + $0x48] sm:$0xff] }
 0x18f   :  { %v4267_v45 = vpop.eup %4266  ;;  %v459_v46 = vmul.f32 %v451_v43, %v427_v42  ;;  %v4811_v42 = vpack.c.bf16 %v834_v41, %v833_v40  ;;  %v835_v43 = vld [vmem:[#allocation12 + $0x40] sm:$0xff]  ;;  %v825_v38 = vld [vmem:[#allocation11 + $0x70] sm:$0xff]  ;;  %v826_v40 = vld [vmem:[#allocation11 + $0x78] sm:$0xff] }
 0x190   :  { %v4269_v47 = vpop.eup %4268  ;;  %v454_v48 = vadd.f32 1.0, %v4267_v45  ;;  %v4815_v45 = vpack.c.bf16 %v836_v44, %v835_v43  ;;  %v4871_v41 = vpack.c.bf16 %v826_v40, %v825_v38  ;;  %v1018_v43 = vld [vmem:[#allocation14 + $0x30] sm:$0xff]  ;;  %v1019_v44 = vld [vmem:[#allocation14 + $0x38] sm:$0xff] }
 0x191   :  { %v453_v51 = vadd.f32 1.0, %v4269_v47  ;;  %3284 = vmatprep.mubr.f32.mxu1 %v459_v46  ;;  %v837_v46 = vld [vmem:[#allocation12 + $0x50] sm:$0xff]  ;;  %v838_v47 = vld [vmem:[#allocation12 + $0x58] sm:$0xff] }
 0x192   :  { %3285 = vmatmul.mubr.f32.gmra.mrb[2].mxu1 %v460_v49  ;;  %v462_v57 = vmul.f32 %v454_v48, %v430_v52  ;;  %v4819_v48 = vpack.c.bf16 %v838_v47, %v837_v46  ;;  %v839_v49 = vld [vmem:[#allocation12 + $0x60] sm:$0xff]  ;;  %v841_v52 = vld [vmem:[#allocation12 + $0x70] sm:$0xff]  ;;  %v4893_v46 = vpack.c.bf16 %v1019_v44, %v1018_v43 }
 0x193   :  { %v4271_v53 = vpop.eup %4270  ;;  %v461_v54 = vmul.f32 %v453_v51, %v429_v50  ;;  %v840_v50 = vld [vmem:[#allocation12 + $0x68] sm:$0xff]  ;;  %v1020_v47 = vld [vmem:[#allocation14 + $0x40] sm:$0xff] }
 0x194   :  { %v4273_v55 = vpop.eup %4272  ;;  %v456_v56 = vadd.f32 1.0, %v4271_v53  ;;  %v4823_v51 = vpack.c.bf16 %v840_v50, %v839_v49  ;;  %v842_v53 = vld [vmem:[#allocation12 + $0x78] sm:$0xff]  ;;  %v1021_v49 = vld [vmem:[#allocation14 + $0x48] sm:$0xff] }
 0x195   :  { %v455_v59 = vadd.f32 1.0, %v4273_v55  ;;  %3287 = vmatprep.mubr.f32.mxu1 %v461_v54  ;;  %v4827_v54 = vpack.c.bf16 %v842_v53, %v841_v52  ;;  %v811_v55 = vld [vmem:[#allocation11] sm:$0xff]  ;;  %v4897_v50 = vpack.c.bf16 %v1021_v49, %v1020_v47  ;;  %v1022_v52 = vld [vmem:[#allocation14 + $0x50] sm:$0xff]  ;;  %v1023_v53 = vld [vmem:[#allocation14 + $0x58] sm:$0xff] }
 0x196   :  { %3288 = vmatmul.mubr.f32.gmra.mrb[4].mxu1 %v462_v57  ;;  %v464_v62 = vmul.f32 %v456_v56, %v432_v60  ;;  %v812_v56 = vld [vmem:[#allocation11 + $0x8] sm:$0xff]  ;;  %v1014_v60 = vld [vmem:[#allocation14 + $0x10] sm:$0xff] }
 0x197   :  { %v463_v61 = vmul.f32 %v455_v59, %v431_v58  ;;  %v4832_v57 = vpack.c.bf16 %v812_v56, %v811_v55  ;;  %v1012_v58 = vld [vmem:[#allocation14] sm:$0xff]  ;;  %v1013_v59 = vld [vmem:[#allocation14 + $0x8] sm:$0xff]  ;;  %v4901_v55 = vpack.c.bf16 %v1023_v53, %v1022_v52  ;;  %v4929_v53 = vld [vmem:[%s5219_s14] ss:$0 sm:$0xff]  ;;  %s4483_s14 = smov [#allocation15]  }
 0x198   :  { %v1024_v56 = vld [vmem:[#allocation14 + $0x60] sm:$0xff]  ;;  %s2776_s20 = sshll.u32 %s4483_s14, 4  ;;  %s2777_s20 = int_to_ptr.vmem [resolvable:$true] %s2776_s20 }
 0x199   :  { %3290 = vmatprep.mubr.f32.mxu1 %v463_v61  ;;  %v4835_v61 = vpack.c.bf16 %v1013_v59, %v1012_v58  ;;  %v1025_v58 = vld [vmem:[#allocation14 + $0x68] sm:$0xff]  ;;  %s4440_s15 = scalar_lea.vmem %s2777_s20, 1024  ;;  %p4445_p1 = scmp.lt.s32.totalorder %s2777_s20, %s2777_s20 }
 0x19a   :  { %3291 = vmatmul.mubr.f32.gmra.mrb[6].mxu1 %v464_v62  ;;  %v1015_v62 = vld [vmem:[#allocation14 + $0x18] sm:$0xff]  ;;  %v4905_v59 = vpack.c.bf16 %v1025_v58, %v1024_v56  ;;  %p4441_p0 = scmp.ne.s32.totalorder %s2777_s20, %s4440_s15  ;;  %p4446_p2 = scmp.lt.s32.totalorder %s4440_s15, %s4440_s15 }
 0x19b   :  { %3309 = vmatprep.mubr.msk.f32.mxu1 %vm648_vm2, %v2801_v5  ;;  %v4837_v1 = vpack.c.bf16 %v1015_v62, %v1014_v60  ;;  %v4842_v5 = vpack.c.bf16 %v1017_v4, %v1016_v3  ;;  %v1026_v60 = vld [vmem:[#allocation14 + $0x70] sm:$0xff]  ;;  %v1027_v62 = vld [vmem:[#allocation14 + $0x78] sm:$0xff] }
 0x19c   :  { %v4909_v3 = vpack.c.bf16 %v1027_v62, %v1026_v60  ;;  %v4916_v4 = vld [vmem:[%s5217_s12] ss:$0 sm:$0xff]  ;;  %p4447_p3 = por %p4446_p2, %p4445_p1 }
 0x19e   :  { %p4448_p4 = pnand %p4447_p3, %p4441_p0 }
 0x261   :  { %v3283_v7 = vpop.f32.mrb[0].mxu1 }
 0x262   :  { %v4770_v8 = vadd.f32 %v3283_v7, %v2800_v6  ;;  %v554_v9 = vpop.f32.mrb[1].mxu1  ;;  %v814_v7 = vld [vmem:[#allocation11 + $0x18] sm:$0xff] }
 0x263   :  { %v4772_v10 = vadd.f32 %v2800_v6, %v554_v9 }
 0x265   :  { %v3286_v11 = vpop.f32.mrb[2].mxu1  ;;  %v3834_v12 = vpack.c.bf16 %v4770_v8, %v4772_v10 }
 0x266   :  { %v4776_v13 = vadd.f32 %v3286_v11, %v2800_v6  ;;  %v564_v14 = vpop.f32.mrb[3].mxu1 }
 0x267   :  { %v4778_v15 = vadd.f32 %v2800_v6, %v564_v14  ;;  %3835 = vmatprep.subr.bf16.mxu1 %v3834_v12  ;;  %3851 = vmatprep.subr.bf16.mxu0 %v3834_v12 }
 0x268   :  { %3837 = vmatpush3.bf16.msra.mxu1 %v3834_v12  ;;  %3853 = vmatpush3.bf16.msra.mxu0 %v3834_v12 }
 0x269   :  { %v3289_v16 = vpop.f32.mrb[4].mxu1  ;;  %v3838_v17 = vpack.c.bf16 %v4776_v13, %v4778_v15 }
 0x26a   :  { %v4782_v18 = vadd.f32 %v3289_v16, %v2800_v6  ;;  %v574_v19 = vpop.f32.mrb[5].mxu1 }
 0x26b   :  { %v4784_v20 = vadd.f32 %v2800_v6, %v574_v19  ;;  %3839 = vmatprep.subr.bf16.mxu1 %v3838_v17  ;;  %3855 = vmatprep.subr.bf16.mxu0 %v3838_v17  ;;  %v816_v19 = vld [vmem:[#allocation11 + $0x28] sm:$0xff] }
 0x26c   :  { %3841 = vmatpush3.bf16.msra.mxu1 %v3838_v17  ;;  %3857 = vmatpush3.bf16.msra.mxu0 %v3838_v17  ;;  %v815_v17 = vld [vmem:[#allocation11 + $0x20] sm:$0xff] }
 0x26d   :  { %v3292_v21 = vpop.f32.mrb[6].mxu1  ;;  %v3842_v22 = vpack.c.bf16 %v4782_v18, %v4784_v20 }
 0x26e   :  { %v4788_v23 = vadd.f32 %v3292_v21, %v2800_v6  ;;  %v584_v24 = vpop.f32.mrb[7].mxu1  ;;  %v4851_v21 = vpack.c.bf16 %v816_v19, %v815_v17 }
 0x26f   :  { %v4790_v27 = vadd.f32 %v2800_v6, %v584_v24  ;;  %3843 = vmatprep.subr.bf16.mxu1 %v3842_v22  ;;  %3859 = vmatprep.subr.bf16.mxu0 %v3842_v22  ;;  %v813_v6 = vld [vmem:[#allocation11 + $0x10] sm:$0xff]  ;;  %v818_v24 = vld [vmem:[#allocation11 + $0x38] sm:$0xff] }
 0x270   :  { %3845 = vmatpush3.bf16.msra.mxu1 %v3842_v22  ;;  %3861 = vmatpush3.bf16.msra.mxu0 %v3842_v22  ;;  %v4847_v14 = vpack.c.bf16 %v814_v7, %v813_v6  ;;  %v817_v22 = vld [vmem:[#allocation11 + $0x30] sm:$0xff] }
 0x271   :  { %v3846_v29 = vpack.c.bf16 %v4788_v23, %v4790_v27  ;;  %v4855_v25 = vpack.c.bf16 %v818_v24, %v817_v22 }
 0x273   :  { %3847 = vmatprep.subr.bf16.mxu1 %v3846_v29  ;;  %3863 = vmatprep.subr.bf16.mxu0 %v3846_v29 }
 0x274   :  { %3849 = vmatpush3.bf16.msra.mxu1 %v3846_v29  ;;  %3865 = vmatpush3.bf16.msra.mxu0 %v3846_v29  ;;  %v4859_v29 = vpack.c.bf16 %v820_v28, %v819_v26 }
 0x275   :  { %3867 = vmatprep.subr.bf16.mxu1 %v4795_v30  ;;  %3931 = vmatprep.subr.bf16.mxu0 %v4835_v61 }
 0x277   :  { %3329 = vmatmul.mubr.msk.f32.vlgmr.msra.gmra.mrb[8].mxu0 %vm648_vm2, %v2804_v36  ;;  %3310 = vmatmul.mubr.msk.f32.vlgmr.msra.gmra.mrb[8].mxu1 %vm648_vm2, %v2802_v34  ;;  %v823_v34 = vld [vmem:[#allocation11 + $0x60] sm:$0xff]  ;;  %v824_v36 = vld [vmem:[#allocation11 + $0x68] sm:$0xff] }
 0x278   :  { %3869 = vmatpush3.bf16.msra.mxu1 %v4795_v30  ;;  %3933 = vmatpush3.bf16.msra.mxu0 %v4835_v61  ;;  %v4867_v37 = vpack.c.bf16 %v824_v36, %v823_v34  ;;  %v1111_v34 = vshrl.u32 %v614_v63, 7  ;;  %v2811_v36 = vld [vmem:[#allocation3] ss:$0 sm:$0xff] }
 0x279   :  { %3871 = vmatprep.subr.bf16.mxu1 %v4800_v35  ;;  %3935 = vmatprep.subr.bf16.mxu0 %v4837_v1 }
 0x27a   :  { %v1112_v38 = vadd.s32 8, %v1111_v34  ;;  %vm1123_vm6 = vcmp.eq.s32.totalorder %v1111_v34, %v2811_v36  ;;  %v1113_v43 = vadd.s32 16, %v1111_v34  ;;  %v1114_v44 = vadd.s32 24, %v1111_v34 }
 0x27b   :  { %v4922_v40 = vsel %vm1123_vm6, 1.0, %v4482_v2  ;;  %v1115_v47 = vadd.s32 32, %v1111_v34  ;;  %v1116_v49 = vadd.s32 40, %v1111_v34  ;;  %v1117_v63 = vadd.s32 48, %v1111_v34 }
 0x27c   :  { %3873 = vmatpush3.bf16.msra.mxu1 %v4800_v35  ;;  %3937 = vmatpush3.bf16.msra.mxu0 %v4837_v1  ;;  %vm1124_vm8 = vcmp.eq.s32.totalorder %v1112_v38, %v2811_v36  ;;  %vm1125_vm9 = vcmp.eq.s32.totalorder %v1113_v43, %v2811_v36  ;;  %vm1126_vm10 = vcmp.eq.s32.totalorder %v1114_v44, %v2811_v36  ;;  %v1118_v52 = vadd.s32 56, %v1111_v34 }
 0x27d   :  { %3875 = vmatprep.subr.bf16.mxu1 %v4807_v39  ;;  %3939 = vmatprep.subr.bf16.mxu0 %v4842_v5  ;;  %vm1127_vm11 = vcmp.eq.s32.totalorder %v1115_v47, %v2811_v36  ;;  %vm1128_vm12 = vcmp.eq.s32.totalorder %v1116_v49, %v2811_v36  ;;  %vm1129_vm13 = vcmp.eq.s32.totalorder %v1117_v63, %v2811_v36 }
 0x27e   :  { %vm1130_vm14 = vcmp.eq.s32.totalorder %v1118_v52, %v2811_v36 }
 0x280   :  { %3877 = vmatpush3.bf16.msra.mxu1 %v4807_v39  ;;  %3941 = vmatpush3.bf16.msra.mxu0 %v4842_v5 }
 0x281   :  { %3879 = vmatprep.subr.bf16.mxu1 %v4811_v42  ;;  %3943 = vmatprep.subr.bf16.mxu0 %v4893_v46 }
 0x284   :  { %3881 = vmatpush3.bf16.msra.mxu1 %v4811_v42  ;;  %3945 = vmatpush3.bf16.msra.mxu0 %v4893_v46 }
 0x285   :  { %3883 = vmatprep.subr.bf16.mxu1 %v4815_v45  ;;  %3947 = vmatprep.subr.bf16.mxu0 %v4897_v50 }
 0x288   :  { %3885 = vmatpush3.bf16.msra.mxu1 %v4815_v45  ;;  %3949 = vmatpush3.bf16.msra.mxu0 %v4897_v50 }
 0x289   :  { %3887 = vmatprep.subr.bf16.mxu1 %v4819_v48  ;;  %3951 = vmatprep.subr.bf16.mxu0 %v4901_v55 }
 0x28c   :  { %3889 = vmatpush3.bf16.msra.mxu1 %v4819_v48  ;;  %3953 = vmatpush3.bf16.msra.mxu0 %v4901_v55 }
 0x28d   :  { %3891 = vmatprep.subr.bf16.mxu1 %v4823_v51  ;;  %3955 = vmatprep.subr.bf16.mxu0 %v4905_v59 }
 0x290   :  { %3893 = vmatpush3.bf16.msra.mxu1 %v4823_v51  ;;  %3957 = vmatpush3.bf16.msra.mxu0 %v4905_v59 }
 0x291   :  { %3895 = vmatprep.subr.bf16.mxu1 %v4827_v54  ;;  %3959 = vmatprep.subr.bf16.mxu0 %v4909_v3 }
 0x294   :  { %3897 = vmatpush3.bf16.msra.mxu1 %v4827_v54  ;;  %3961 = vmatpush3.bf16.msra.mxu0 %v4909_v3 }
 0x295   :  { %3899 = vmatprep.subr.bf16.mxu1 %v4832_v57 }
 0x34a   :  { %v3330_v9 = vpop.f32.mrb[8].mxu0  ;;  %v3311_v11 = vpop.f32.mrb[8].mxu1 }
 0x34b   :  { %v802_v12 = vpop.f32.mrb[9].mxu0  ;;  %v721_v16 = vpop.f32.mrb[9].mxu1 }
 0x34c   :  { %3363 = vmatprep.mubr.f32.mxu1 %v802_v12 }
 0x34d   :  { %3364 = vmatmul.mubr.f32.vlgmr.msra.gmra.mrb[10].mxu1 %v3330_v9 }
 0x34e   :  { %3901 = vmatpush3.bf16.msra.mxu1 %v4832_v57  ;;  %3398 = vmatprep.mubr.f32.mxu1 %v721_v16 }
 0x34f   :  { %3903 = vmatprep.subr.bf16.mxu1 %v4847_v14 }
 0x352   :  { %3905 = vmatpush3.bf16.msra.mxu1 %v4847_v14 }
 0x353   :  { %3907 = vmatprep.subr.bf16.mxu1 %v4851_v21 }
 0x356   :  { %3909 = vmatpush3.bf16.msra.mxu1 %v4851_v21 }
 0x357   :  { %3911 = vmatprep.subr.bf16.mxu1 %v4855_v25 }
 0x35a   :  { %3913 = vmatpush3.bf16.msra.mxu1 %v4855_v25 }
 0x35b   :  { %3915 = vmatprep.subr.bf16.mxu1 %v4859_v29 }
 0x35e   :  { %3917 = vmatpush3.bf16.msra.mxu1 %v4859_v29 }
 0x35f   :  { %3919 = vmatprep.subr.bf16.mxu1 %v4863_v33 }
 0x362   :  { %3921 = vmatpush3.bf16.msra.mxu1 %v4863_v33 }
 0x363   :  { %3923 = vmatprep.subr.bf16.mxu1 %v4867_v37 }
 0x366   :  { %3925 = vmatpush3.bf16.msra.mxu1 %v4867_v37 }
 0x367   :  { %3927 = vmatprep.subr.bf16.mxu1 %v4871_v41 }
 0x36a   :  { %3929 = vmatpush3.bf16.msra.mxu1 %v4871_v41 }
 0x36b   :  { %3999 = vmatprep.subr.bf16.mxu1 %v4795_v30 }
 0x36d   :  { %3399 = vmatmul.mubr.f32.vlgmr.msra.gmra.mrb[10].mxu1 %v3311_v11 }
 0x36e   :  { %4001 = vmatpush3.bf16.msra.mxu1 %v4795_v30 }
 0x36f   :  { %4003 = vmatprep.subr.bf16.mxu1 %v4800_v35 }
 0x372   :  { %4005 = vmatpush3.bf16.msra.mxu1 %v4800_v35 }
 0x373   :  { %4007 = vmatprep.subr.bf16.mxu1 %v4807_v39 }
 0x376   :  { %4009 = vmatpush3.bf16.msra.mxu1 %v4807_v39 }
 0x377   :  { %4011 = vmatprep.subr.bf16.mxu1 %v4811_v42 }
 0x37a   :  { %4013 = vmatpush3.bf16.msra.mxu1 %v4811_v42 }
 0x37b   :  { %4015 = vmatprep.subr.bf16.mxu1 %v4815_v45 }
 0x37e   :  { %4017 = vmatpush3.bf16.msra.mxu1 %v4815_v45 }
 0x37f   :  { %4019 = vmatprep.subr.bf16.mxu1 %v4819_v48 }
 0x382   :  { %4021 = vmatpush3.bf16.msra.mxu1 %v4819_v48 }
 0x383   :  { %4023 = vmatprep.subr.bf16.mxu1 %v4823_v51 }
 0x386   :  { %4025 = vmatpush3.bf16.msra.mxu1 %v4823_v51 }
 0x387   :  { %4027 = vmatprep.subr.bf16.mxu1 %v4827_v54 }
 0x38a   :  { %4029 = vmatpush3.bf16.msra.mxu1 %v4827_v54 }
 0x38b   :  { %4031 = vmatprep.subr.bf16.mxu1 %v4832_v57 }
 0x440   :  { %v3400_v6 = vpop.f32.mrb[10].mxu1 }
 0x441   :  { %v1001_v7 = vadd.f32 %v3400_v6, %v4916_v4  ;;  %v984_v9 = vpop.f32.mrb[11].mxu1 }
 0x442   :  { %v1000_v11 = vadd.f32 %v4916_v4, %v984_v9  ;;  %v4939_v9 = vsel %vm1125_vm9, 1.0, %v4482_v2 }
 0x443   :  { %v1005_v12 = vmul.f32 0.70710677, %v1001_v7  ;;  %v1003_v28 = vmul.f32 0.5, %v1001_v7  ;;  %v4935_v7 = vsel %vm1124_vm8, 1.0, %v4482_v2 }
 0x444   :  { %v1004_v16 = vmul.f32 0.70710677, %v1000_v11  ;;  %v1002_v24 = vmul.f32 0.5, %v1000_v11  ;;  %v4947_v11 = vsel %vm1126_vm10, 1.0, %v4482_v2 }
 0x445   :  { %4274 = verf.f32 %v1005_v12  ;;  %v4951_v12 = vsel %vm1127_vm11, 1.0, %v4482_v2 }
 0x446   :  { %4276 = verf.f32 %v1004_v16  ;;  %v4959_v16 = vsel %vm1128_vm12, 1.0, %v4482_v2 }
 0x44f   :  { %v4275_v17 = vpop.eup %4274 }
 0x450   :  { %v4277_v19 = vpop.eup %4276  ;;  %v1009_v22 = vadd.f32 1.0, %v4275_v17  ;;  %v4963_v17 = vsel %vm1129_vm13, 1.0, %v4482_v2 }
 0x451   :  { %v1008_v26 = vadd.f32 1.0, %v4277_v19  ;;  %v1348_v19 = vpop.permute.xlu0 %1347 }
 0x452   :  { %v1011_v32 = vmul.f32 %v1009_v22, %v1003_v28  ;;  %vm1352_vm15 = vcmp.eq.s32.totalorder %v4759_v0, %v1348_v19  ;;  %v4972_v22 = vsel %vm1130_vm14, 1.0, %v4482_v2 }
 0x453   :  { %v1010_v31 = vmul.f32 %v1008_v26, %v1002_v24  ;;  %v2828_v24 = vsel %vm1352_vm15, 1.0, %v4482_v2 }
 0x455   :  { %3433 = vmatprep.mubr.f32.mxu0 %v1010_v31 }
 0x456   :  { %3434 = vmatmul.mubr.f32.vlgmr.msra.gmra.mrb[10].mxu0 %v1011_v32 }
 0x457   :  { %3440 = vmatprep.mubr.msk.f32.mxu0 %vm1155_vm7, %v4922_v40 }
 0x529   :  { %v3435_v56 = vpop.f32.mrb[10].mxu0 }
 0x52a   :  { %v1107_v58 = vadd.f32 %v3435_v56, %v4929_v53  ;;  %v1101_v60 = vpop.f32.mrb[11].mxu0 }
 0x52b   :  { %v1102_v62 = vadd.f32 %v4929_v53, %v1101_v60  ;;  %v1360_v60 = vpop.permute.xlu0 %1359 }
 0x52c   :  { %vm1364_vm1 = vcmp.eq.s32.totalorder %v4759_v0, %v1360_v60 }
 0x52d   :  { %v3962_v6 = vpack.c.bf16 %v1107_v58, %v1102_v62  ;;  %v2830_v62 = vsel %vm1364_vm1, 1.0, %v4482_v2 }
 0x52f   :  { %3963 = vmatprep.subr.bf16.mxu0 %v3962_v6  ;;  %v2067_v60 = vpop.permute.xlu0 %2066 }
 0x530   :  { %3965 = vmatpush3.bf16.msra.mxu0 %v3962_v6  ;;  %vm2071_vm4 = vcmp.eq.s32.totalorder %v4759_v0, %v2067_v60 }
 0x533   :  { %3441 = vmatmul.mubr.msk.f32.vlgmr.msra.gmra.mrb[12].mxu0 %vm1155_vm7, %v4935_v7 }
 0x534   :  { %3443 = vmatprep.mubr.msk.f32.mxu0 %vm1155_vm7, %v4939_v9 }
 0x537   :  { %3444 = vmatmul.mubr.msk.f32.gmra.mrb[14].mxu0 %vm1155_vm7, %v4947_v11 }
 0x538   :  { %3446 = vmatprep.mubr.msk.f32.mxu0 %vm1155_vm7, %v4951_v12 }
 0x53b   :  { %3447 = vmatmul.mubr.msk.f32.gmra.mrb[16].mxu0 %vm1155_vm7, %v4959_v16 }
 0x53c   :  { %3449 = vmatprep.mubr.msk.f32.mxu0 %vm1155_vm7, %v4963_v17 }
 0x53f   :  { %3450 = vmatmul.mubr.msk.f32.gmra.mrb[18].mxu0 %vm1155_vm7, %v4972_v22 }
 0x540   :  { %3468 = vmatprep.mubr.msk.f32.mxu0 %vm648_vm2, %v2828_v24 }
 0x606   :  { %v3442_v26 = vpop.f32.mrb[12].mxu0 }
 0x607   :  { %v4979_v28 = vadd.f32 %v3442_v26, %v4770_v8  ;;  %v1246_v31 = vpop.f32.mrb[13].mxu0 }
 0x608   :  { %v4982_v32 = vadd.f32 %v1246_v31, %v4772_v10 }
 0x60a   :  { %v3445_v34 = vpop.f32.mrb[14].mxu0  ;;  %v3966_v36 = vpack.c.bf16 %v4979_v28, %v4982_v32 }
 0x60b   :  { %v4987_v38 = vadd.f32 %v3445_v34, %v4776_v13  ;;  %v1256_v43 = vpop.f32.mrb[15].mxu0 }
 0x60c   :  { %v4990_v44 = vadd.f32 %v1256_v43, %v4778_v15  ;;  %3967 = vmatprep.subr.bf16.mxu0 %v3966_v36 }
 0x60d   :  { %3969 = vmatpush3.bf16.msra.mxu0 %v3966_v36 }
 0x60e   :  { %v3448_v47 = vpop.f32.mrb[16].mxu0  ;;  %v3970_v8 = vpack.c.bf16 %v4987_v38, %v4990_v44 }
 0x60f   :  { %v4995_v10 = vadd.f32 %v3448_v47, %v4782_v18  ;;  %v1266_v49 = vpop.f32.mrb[17].mxu0 }
 0x610   :  { %v4998_v63 = vadd.f32 %v1266_v49, %v4784_v20  ;;  %3971 = vmatprep.subr.bf16.mxu0 %v3970_v8  ;;  %v1351_v20 = vpop.permute.xlu1 %1350 }
 0x611   :  { %3973 = vmatpush3.bf16.msra.mxu0 %v3970_v8  ;;  %vm1353_vm0 = vcmp.eq.s32.totalorder %v4759_v0, %v1351_v20 }
 0x612   :  { %v3451_v13 = vpop.f32.mrb[18].mxu0  ;;  %v3974_v15 = vpack.c.bf16 %v4995_v10, %v4998_v63 }
 0x613   :  { %v5003_v52 = vadd.f32 %v3451_v13, %v4788_v23  ;;  %v1276_v56 = vpop.f32.mrb[19].mxu0  ;;  %v2829_v23 = vsel %vm1353_vm0, 1.0, %v4482_v2 }
 0x614   :  { %v5006_v58 = vadd.f32 %v1276_v56, %v4790_v27  ;;  %3975 = vmatprep.subr.bf16.mxu0 %v3974_v15  ;;  %v1363_v27 = vpop.permute.xlu1 %1362 }
 0x615   :  { %3977 = vmatpush3.bf16.msra.mxu0 %v3974_v15  ;;  %vm1365_vm3 = vcmp.eq.s32.totalorder %v4759_v0, %v1363_v27 }
 0x616   :  { %v3978_v18 = vpack.c.bf16 %v5003_v52, %v5006_v58  ;;  %v2831_v6 = vsel %vm1365_vm3, 1.0, %v4482_v2 }
 0x618   :  { %3979 = vmatprep.subr.bf16.mxu0 %v3978_v18 }
 0x619   :  { %3981 = vmatpush3.bf16.msra.mxu0 %v3978_v18 }
 0x61a   :  { %3983 = vmatprep.subr.bf16.mxu0 %v3966_v36 }
 0x61c   :  { %3469 = vmatmul.mubr.msk.f32.vlgmr.msra.gmra.mrb[20].mxu0 %vm648_vm2, %v2829_v23  ;;  %v2855_v23 = vsel %vm2071_vm4, 1.0, %v4482_v2 }
 0x61d   :  { %3985 = vmatpush3.bf16.msra.mxu0 %v3966_v36  ;;  %3487 = vmatprep.mubr.msk.f32.mxu0 %vm648_vm2, %v2830_v62 }
 0x61e   :  { %3987 = vmatprep.subr.bf16.mxu0 %v3970_v8 }
 0x621   :  { %3989 = vmatpush3.bf16.msra.mxu0 %v3970_v8 }
 0x622   :  { %3991 = vmatprep.subr.bf16.mxu0 %v3974_v15 }
 0x625   :  { %3993 = vmatpush3.bf16.msra.mxu0 %v3974_v15 }
 0x626   :  { %3995 = vmatprep.subr.bf16.mxu0 %v3978_v18 }
 0x629   :  { %3997 = vmatpush3.bf16.msra.mxu0 %v3978_v18 }
 0x62a   :  { %4063 = vmatprep.subr.bf16.mxu0 %v4835_v61 }
 0x62c   :  { %3488 = vmatmul.mubr.msk.f32.vlgmr.msra.gmra.mrb[22].mxu0 %vm648_vm2, %v2831_v6 }
 0x62d   :  { %4065 = vmatpush3.bf16.msra.mxu0 %v4835_v61 }
 0x62e   :  { %4067 = vmatprep.subr.bf16.mxu0 %v4837_v1 }
 0x631   :  { %4069 = vmatpush3.bf16.msra.mxu0 %v4837_v1 }
 0x632   :  { %4071 = vmatprep.subr.bf16.mxu0 %v4842_v5 }
 0x635   :  { %4073 = vmatpush3.bf16.msra.mxu0 %v4842_v5 }
 0x636   :  { %4075 = vmatprep.subr.bf16.mxu0 %v4893_v46 }
 0x639   :  { %4077 = vmatpush3.bf16.msra.mxu0 %v4893_v46 }
 0x63a   :  { %4079 = vmatprep.subr.bf16.mxu0 %v4897_v50 }
 0x63d   :  { %4081 = vmatpush3.bf16.msra.mxu0 %v4897_v50 }
 0x63e   :  { %4083 = vmatprep.subr.bf16.mxu0 %v4901_v55 }
 0x641   :  { %4085 = vmatpush3.bf16.msra.mxu0 %v4901_v55 }
 0x642   :  { %4087 = vmatprep.subr.bf16.mxu0 %v4905_v59 }
 0x645   :  { %4089 = vmatpush3.bf16.msra.mxu0 %v4905_v59 }
 0x646   :  { %4091 = vmatprep.subr.bf16.mxu0 %v4909_v3 }
 0x649   :  { %4093 = vmatpush3.bf16.msra.mxu0 %v4909_v3 }
 0x6ef   :  { %v3470_v19 = vpop.f32.mrb[20].mxu0 }
 0x6f0   :  { %v1450_v24 = vpop.f32.mrb[21].mxu0 }
 0x6ff   :  { %v3489_v26 = vpop.f32.mrb[22].mxu0 }
 0x700   :  { %v1531_v31 = vpop.f32.mrb[23].mxu0 }
 0x701   :  { %3522 = vmatprep.mubr.f32.mxu1 %v1531_v31 }
 0x702   :  { %3523 = vmatmul.mubr.f32.vlgmr.msra.gmra.mrb[12].mxu1 %v3489_v26 }
 0x703   :  { %4033 = vmatpush3.bf16.msra.mxu1 %v4832_v57  ;;  %3557 = vmatprep.mubr.f32.mxu1 %v1450_v24 }
 0x704   :  { %4035 = vmatprep.subr.bf16.mxu1 %v4847_v14 }
 0x707   :  { %4037 = vmatpush3.bf16.msra.mxu1 %v4847_v14 }
 0x708   :  { %4039 = vmatprep.subr.bf16.mxu1 %v4851_v21 }
 0x70b   :  { %4041 = vmatpush3.bf16.msra.mxu1 %v4851_v21 }
 0x70c   :  { %4043 = vmatprep.subr.bf16.mxu1 %v4855_v25 }
 0x70f   :  { %4045 = vmatpush3.bf16.msra.mxu1 %v4855_v25 }
 0x710   :  { %4047 = vmatprep.subr.bf16.mxu1 %v4859_v29 }
 0x713   :  { %4049 = vmatpush3.bf16.msra.mxu1 %v4859_v29 }
 0x714   :  { %4051 = vmatprep.subr.bf16.mxu1 %v4863_v33 }
 0x717   :  { %4053 = vmatpush3.bf16.msra.mxu1 %v4863_v33 }
 0x718   :  { %4055 = vmatprep.subr.bf16.mxu1 %v4867_v37 }
 0x71b   :  { %4057 = vmatpush3.bf16.msra.mxu1 %v4867_v37 }
 0x71c   :  { %4059 = vmatprep.subr.bf16.mxu1 %v4871_v41 }
 0x71f   :  { %4061 = vmatpush3.bf16.msra.mxu1 %v4871_v41 }
 0x720   :  { %4131 = vmatprep.subr.bf16.mxu1 %v4795_v30 }
 0x722   :  { %3558 = vmatmul.mubr.f32.vlgmr.msra.gmra.mrb[12].mxu1 %v3470_v19 }
 0x723   :  { %4133 = vmatpush3.bf16.msra.mxu1 %v4795_v30 }
 0x724   :  { %4135 = vmatprep.subr.bf16.mxu1 %v4800_v35 }
 0x727   :  { %4137 = vmatpush3.bf16.msra.mxu1 %v4800_v35 }
 0x728   :  { %4139 = vmatprep.subr.bf16.mxu1 %v4807_v39 }
 0x72b   :  { %4141 = vmatpush3.bf16.msra.mxu1 %v4807_v39 }
 0x72c   :  { %4143 = vmatprep.subr.bf16.mxu1 %v4811_v42 }
 0x72f   :  { %4145 = vmatpush3.bf16.msra.mxu1 %v4811_v42 }
 0x730   :  { %4147 = vmatprep.subr.bf16.mxu1 %v4815_v45 }
 0x733   :  { %4149 = vmatpush3.bf16.msra.mxu1 %v4815_v45 }
 0x734   :  { %4151 = vmatprep.subr.bf16.mxu1 %v4819_v48 }
 0x737   :  { %4153 = vmatpush3.bf16.msra.mxu1 %v4819_v48 }
 0x738   :  { %4155 = vmatprep.subr.bf16.mxu1 %v4823_v51 }
 0x73b   :  { %4157 = vmatpush3.bf16.msra.mxu1 %v4823_v51 }
 0x73c   :  { %4159 = vmatprep.subr.bf16.mxu1 %v4827_v54 }
 0x73f   :  { %4161 = vmatpush3.bf16.msra.mxu1 %v4827_v54 }
 0x740   :  { %4163 = vmatprep.subr.bf16.mxu1 %v4832_v57 }
 0x7f5   :  { %v3559_v30 = vpop.f32.mrb[12].mxu1 }
 0x7f6   :  { %v1730_v35 = vadd.f32 %v3559_v30, %v4916_v4  ;;  %v1713_v39 = vpop.f32.mrb[13].mxu1 }
 0x7f7   :  { %v1729_v42 = vadd.f32 %v4916_v4, %v1713_v39 }
 0x7f8   :  { %v1734_v45 = vmul.f32 0.70710677, %v1730_v35  ;;  %v1732_v8 = vmul.f32 0.5, %v1730_v35 }
 0x7f9   :  { %v1733_v34 = vmul.f32 0.70710677, %v1729_v42  ;;  %v1731_v51 = vmul.f32 0.5, %v1729_v42 }
 0x7fa   :  { %4278 = verf.f32 %v1734_v45 }
 0x7fb   :  { %4280 = verf.f32 %v1733_v34 }
 0x804   :  { %v4279_v48 = vpop.eup %4278 }
 0x805   :  { %v4281_v36 = vpop.eup %4280  ;;  %v1738_v43 = vadd.f32 1.0, %v4279_v48 }
 0x806   :  { %v1737_v47 = vadd.f32 1.0, %v4281_v36 }
 0x807   :  { %v1740_v54 = vmul.f32 %v1738_v43, %v1732_v8  ;;  %v2070_v43 = vpop.permute.xlu1 %2069 }
 0x808   :  { %v1739_v49 = vmul.f32 %v1737_v47, %v1731_v51  ;;  %vm2072_vm5 = vcmp.eq.s32.totalorder %v4759_v0, %v2070_v43 }
 0x80a   :  { %3592 = vmatprep.mubr.f32.mxu0 %v1739_v49 }
 0x80b   :  { %3593 = vmatmul.mubr.f32.vlgmr.msra.gmra.mrb[24].mxu0 %v1740_v54 }
 0x80c   :  { %3599 = vmatprep.mubr.msk.f32.mxu0 %vm1155_vm7, %v4922_v40 }
 0x8de   :  { %v3594_v13 = vpop.f32.mrb[24].mxu0 }
 0x8df   :  { %v1836_v15 = vadd.f32 %v3594_v13, %v4929_v53  ;;  %v1830_v56 = vpop.f32.mrb[25].mxu0 }
 0x8e0   :  { %v1831_v18 = vadd.f32 %v4929_v53, %v1830_v56 }
 0x8e2   :  { %v4094_v20 = vpack.c.bf16 %v1836_v15, %v1831_v18 }
 0x8e4   :  { %4095 = vmatprep.subr.bf16.mxu0 %v4094_v20 }
 0x8e5   :  { %4097 = vmatpush3.bf16.msra.mxu0 %v4094_v20 }
 0x8e8   :  { %3600 = vmatmul.mubr.msk.f32.vlgmr.msra.gmra.mrb[26].mxu0 %vm1155_vm7, %v4935_v7 }
 0x8e9   :  { %3602 = vmatprep.mubr.msk.f32.mxu0 %vm1155_vm7, %v4939_v9 }
 0x8ec   :  { %3603 = vmatmul.mubr.msk.f32.gmra.mrb[28].mxu0 %vm1155_vm7, %v4947_v11 }
 0x8ed   :  { %3605 = vmatprep.mubr.msk.f32.mxu0 %vm1155_vm7, %v4951_v12 }
 0x8f0   :  { %3606 = vmatmul.mubr.msk.f32.gmra.mrb[30].mxu0 %vm1155_vm7, %v4959_v16 }
 0x8f1   :  { %3608 = vmatprep.mubr.msk.f32.mxu0 %vm1155_vm7, %v4963_v17 }
 0x8f4   :  { %3609 = vmatmul.mubr.msk.f32.gmra.mrb[32].mxu0 %vm1155_vm7, %v4972_v22 }
 0x8f5   :  { %3627 = vmatprep.mubr.msk.f32.mxu0 %vm648_vm2, %v2855_v23 }
 0x9bb   :  { %v3601_v62 = vpop.f32.mrb[26].mxu0 }
 0x9bc   :  { %v5091_v27 = vadd.f32 %v3601_v62, %v4979_v28  ;;  %v1965_v6 = vpop.f32.mrb[27].mxu0 }
 0x9bd   :  { %v5094_v19 = vadd.f32 %v1965_v6, %v4982_v32 }
 0x9bf   :  { %v3604_v24 = vpop.f32.mrb[28].mxu0  ;;  %v4098_v26 = vpack.c.bf16 %v5091_v27, %v5094_v19 }
 0x9c0   :  { %v5099_v31 = vadd.f32 %v3604_v24, %v4987_v38  ;;  %v1975_v30 = vpop.f32.mrb[29].mxu0 }
 0x9c1   :  { %v5102_v35 = vadd.f32 %v1975_v30, %v4990_v44  ;;  %4099 = vmatprep.subr.bf16.mxu0 %v4098_v26 }
 0x9c2   :  { %4101 = vmatpush3.bf16.msra.mxu0 %v4098_v26 }
 0x9c3   :  { %v3607_v39 = vpop.f32.mrb[30].mxu0  ;;  %v4102_v28 = vpack.c.bf16 %v5099_v31, %v5102_v35 }
 0x9c4   :  { %v5107_v32 = vadd.f32 %v3607_v39, %v4995_v10  ;;  %v1985_v42 = vpop.f32.mrb[31].mxu0  ;;  %v2079_v10 = vpop.permute.xlu0 %2078 }
 0x9c5   :  { %v5110_v45 = vadd.f32 %v1985_v42, %v4998_v63  ;;  %4103 = vmatprep.subr.bf16.mxu0 %v4102_v28  ;;  %vm2083_vm6 = vcmp.eq.s32.totalorder %v4759_v0, %v2079_v10 }
 0x9c6   :  { %4105 = vmatpush3.bf16.msra.mxu0 %v4102_v28  ;;  %v2857_v51 = vsel %vm2083_vm6, 1.0, %v4482_v2 }
 0x9c7   :  { %v3610_v38 = vpop.f32.mrb[32].mxu0  ;;  %v4106_v44 = vpack.c.bf16 %v5107_v32, %v5110_v45 }
 0x9c8   :  { %v5115_v34 = vadd.f32 %v3610_v38, %v5003_v52  ;;  %v1995_v48 = vpop.f32.mrb[33].mxu0  ;;  %v2856_v52 = vsel %vm2072_vm5, 1.0, %v4482_v2 }
 0x9c9   :  { %v5118_v36 = vadd.f32 %v1995_v48, %v5006_v58  ;;  %4107 = vmatprep.subr.bf16.mxu0 %v4106_v44  ;;  %v2082_v58 = vpop.permute.xlu1 %2081 }
 0x9ca   :  { %4109 = vmatpush3.bf16.msra.mxu0 %v4106_v44  ;;  %vm2084_vm8 = vcmp.eq.s32.totalorder %v4759_v0, %v2082_v58 }
 0x9cb   :  { %v4110_v63 = vpack.c.bf16 %v5115_v34, %v5118_v36  ;;  %v2858_v47 = vsel %vm2084_vm8, 1.0, %v4482_v2 }
 0x9cd   :  { %4111 = vmatprep.subr.bf16.mxu0 %v4110_v63 }
 0x9ce   :  { %4113 = vmatpush3.bf16.msra.mxu0 %v4110_v63 }
 0x9cf   :  { %4115 = vmatprep.subr.bf16.mxu0 %v4098_v26 }
 0x9d1   :  { %3628 = vmatmul.mubr.msk.f32.vlgmr.msra.gmra.mrb[34].mxu0 %vm648_vm2, %v2856_v52 }
 0x9d2   :  { %4117 = vmatpush3.bf16.msra.mxu0 %v4098_v26  ;;  %3646 = vmatprep.mubr.msk.f32.mxu0 %vm648_vm2, %v2857_v51 }
 0x9d3   :  { %4119 = vmatprep.subr.bf16.mxu0 %v4102_v28 }
 0x9d6   :  { %4121 = vmatpush3.bf16.msra.mxu0 %v4102_v28 }
 0x9d7   :  { %4123 = vmatprep.subr.bf16.mxu0 %v4106_v44 }
 0x9da   :  { %4125 = vmatpush3.bf16.msra.mxu0 %v4106_v44 }
 0x9db   :  { %4127 = vmatprep.subr.bf16.mxu0 %v4110_v63 }
 0x9de   :  { %4129 = vmatpush3.bf16.msra.mxu0 %v4110_v63 }
 0x9df   :  { %4195 = vmatprep.subr.bf16.mxu0 %v4835_v61 }
 0x9e1   :  { %3647 = vmatmul.mubr.msk.f32.vlgmr.msra.gmra.mrb[36].mxu0 %vm648_vm2, %v2858_v47 }
 0x9e2   :  { %4197 = vmatpush3.bf16.msra.mxu0 %v4835_v61 }
 0x9e3   :  { %4199 = vmatprep.subr.bf16.mxu0 %v4837_v1 }
 0x9e6   :  { %4201 = vmatpush3.bf16.msra.mxu0 %v4837_v1 }
 0x9e7   :  { %4203 = vmatprep.subr.bf16.mxu0 %v4842_v5 }
 0x9ea   :  { %4205 = vmatpush3.bf16.msra.mxu0 %v4842_v5 }
 0x9eb   :  { %4207 = vmatprep.subr.bf16.mxu0 %v4893_v46 }
 0x9ee   :  { %4209 = vmatpush3.bf16.msra.mxu0 %v4893_v46 }
 0x9ef   :  { %4211 = vmatprep.subr.bf16.mxu0 %v4897_v50 }
 0x9f2   :  { %4213 = vmatpush3.bf16.msra.mxu0 %v4897_v50 }
 0x9f3   :  { %4215 = vmatprep.subr.bf16.mxu0 %v4901_v55 }
 0x9f6   :  { %4217 = vmatpush3.bf16.msra.mxu0 %v4901_v55 }
 0x9f7   :  { %4219 = vmatprep.subr.bf16.mxu0 %v4905_v59 }
 0x9fa   :  { %4221 = vmatpush3.bf16.msra.mxu0 %v4905_v59 }
 0x9fb   :  { %4223 = vmatprep.subr.bf16.mxu0 %v4909_v3 }
 0x9fe   :  { %4225 = vmatpush3.bf16.msra.mxu0 %v4909_v3 }
 0xaa4   :  { %v3629_v0 = vpop.f32.mrb[34].mxu0 }
 0xaa5   :  { %v2169_v2 = vpop.f32.mrb[35].mxu0 }
 0xab4   :  { %v3648_v61 = vpop.f32.mrb[36].mxu0 }
 0xab5   :  { %v2250_v1 = vpop.f32.mrb[37].mxu0 }
 0xab6   :  { %3681 = vmatprep.mubr.f32.mxu1 %v2250_v1 }
 0xab7   :  { %3682 = vmatmul.mubr.f32.vlgmr.msra.gmra.mrb[14].mxu1 %v3648_v61 }
 0xab8   :  { %4165 = vmatpush3.bf16.msra.mxu1 %v4832_v57  ;;  %3716 = vmatprep.mubr.f32.mxu1 %v2169_v2 }
 0xab9   :  { %4167 = vmatprep.subr.bf16.mxu1 %v4847_v14 }
 0xabc   :  { %4169 = vmatpush3.bf16.msra.mxu1 %v4847_v14 }
 0xabd   :  { %4171 = vmatprep.subr.bf16.mxu1 %v4851_v21 }
 0xac0   :  { %4173 = vmatpush3.bf16.msra.mxu1 %v4851_v21 }
 0xac1   :  { %4175 = vmatprep.subr.bf16.mxu1 %v4855_v25 }
 0xac4   :  { %4177 = vmatpush3.bf16.msra.mxu1 %v4855_v25 }
 0xac5   :  { %4179 = vmatprep.subr.bf16.mxu1 %v4859_v29 }
 0xac8   :  { %4181 = vmatpush3.bf16.msra.mxu1 %v4859_v29 }
 0xac9   :  { %4183 = vmatprep.subr.bf16.mxu1 %v4863_v33 }
 0xacc   :  { %4185 = vmatpush3.bf16.msra.mxu1 %v4863_v33 }
 0xacd   :  { %4187 = vmatprep.subr.bf16.mxu1 %v4867_v37 }
 0xad0   :  { %4189 = vmatpush3.bf16.msra.mxu1 %v4867_v37 }
 0xad1   :  { %4191 = vmatprep.subr.bf16.mxu1 %v4871_v41 }
 0xad4   :  { %4193 = vmatpush3.bf16.msra.mxu1 %v4871_v41 }
 0xad7   :  { %3717 = vmatmul.mubr.f32.vlgmr.msra.gmra.mrb[14].mxu1 %v3629_v0 }
 0xbaa   :  { %v3718_v57 = vpop.f32.mrb[14].mxu1 }
 0xbab   :  { %v2449_v5 = vadd.f32 %v3718_v57, %v4916_v4  ;;  %v2432_v14 = vpop.f32.mrb[15].mxu1 }
 0xbac   :  { %v2448_v21 = vadd.f32 %v4916_v4, %v2432_v14 }
 0xbad   :  { %v2453_v25 = vmul.f32 0.70710677, %v2449_v5  ;;  %v2451_v59 = vmul.f32 0.5, %v2449_v5 }
 0xbae   :  { %v2452_v29 = vmul.f32 0.70710677, %v2448_v21  ;;  %v2450_v55 = vmul.f32 0.5, %v2448_v21 }
 0xbaf   :  { %4282 = verf.f32 %v2453_v25 }
 0xbb0   :  { %4284 = verf.f32 %v2452_v29 }
 0xbb9   :  { %v4283_v33 = vpop.eup %4282 }
 0xbba   :  { %v4285_v46 = vpop.eup %4284  ;;  %v2457_v50 = vadd.f32 1.0, %v4283_v33 }
 0xbbb   :  { %v2456_v37 = vadd.f32 1.0, %v4285_v46 }
 0xbbc   :  { %v2459_v8 = vmul.f32 %v2457_v50, %v2451_v59 }
 0xbbd   :  { %v2458_v3 = vmul.f32 %v2456_v37, %v2450_v55 }
 0xbbf   :  { %3751 = vmatprep.mubr.f32.mxu0 %v2458_v3 }
 0xbc0   :  { %3752 = vmatmul.mubr.f32.vlgmr.msra.gmra.mrb[38].mxu0 %v2459_v8 }
 0xbc1   :  { %3758 = vmatprep.mubr.msk.f32.mxu0 %vm1155_vm7, %v4922_v40 }
 0xc93   :  { %v3753_v41 = vpop.f32.mrb[38].mxu0 }
 0xc94   :  { %v2555_v4 = vadd.f32 %v3753_v41, %v4929_v53  ;;  %v2549_v49 = vpop.f32.mrb[39].mxu0 }
 0xc95   :  { %v2550_v54 = vadd.f32 %v4929_v53, %v2549_v49 }
 0xc97   :  { %v4226_v13 = vpack.c.bf16 %v2555_v4, %v2550_v54 }
 0xc99   :  { %4227 = vmatprep.subr.bf16.mxu0 %v4226_v13 }
 0xc9a   :  { %4229 = vmatpush3.bf16.msra.mxu0 %v4226_v13 }
 0xc9d   :  { %3759 = vmatmul.mubr.msk.f32.vlgmr.msra.gmra.mrb[40].mxu0 %vm1155_vm7, %v4935_v7 }
 0xc9e   :  { %3761 = vmatprep.mubr.msk.f32.mxu0 %vm1155_vm7, %v4939_v9 }
 0xca1   :  { %3762 = vmatmul.mubr.msk.f32.gmra.mrb[42].mxu0 %vm1155_vm7, %v4947_v11 }
 0xca2   :  { %3764 = vmatprep.mubr.msk.f32.mxu0 %vm1155_vm7, %v4951_v12 }
 0xca5   :  { %3765 = vmatmul.mubr.msk.f32.gmra.mrb[44].mxu0 %vm1155_vm7, %v4959_v16 }
 0xca6   :  { %3767 = vmatprep.mubr.msk.f32.mxu0 %vm1155_vm7, %v4963_v17 }
 0xca9   :  { %3768 = vmatmul.mubr.msk.f32.gmra.mrb[46].mxu0 %vm1155_vm7, %v4972_v22 }
 0xd70   :  { %v3760_v40 = vpop.f32.mrb[40].mxu0 }
 0xd71   :  { %v2756_v53 = vadd.f32 %v3760_v40, %v5091_v27  ;;  %v2684_v7 = vpop.f32.mrb[41].mxu0 }
 0xd72   :  { %v2755_v9 = vadd.f32 %v2684_v7, %v5094_v19 }
 0xd73   :  { %2764 = vst [vmem:[#allocation15 + $0x8] sm:$0xff] %v2756_v53 }
 0xd74   :  { %2763 = vst [vmem:[#allocation15] sm:$0xff] %v2755_v9  ;;  %v3763_v11 = vpop.f32.mrb[42].mxu0 }
 0xd75   :  { %v2758_v12 = vadd.f32 %v3763_v11, %v5099_v31  ;;  %v2694_v15 = vpop.f32.mrb[43].mxu0 }
 0xd76   :  { %v2757_v16 = vadd.f32 %v2694_v15, %v5102_v35 }
 0xd77   :  { %2766 = vst [vmem:[#allocation15 + $0x18] sm:$0xff] %v2758_v12 }
 0xd78   :  { %2765 = vst [vmem:[#allocation15 + $0x10] sm:$0xff] %v2757_v16  ;;  %v3766_v17 = vpop.f32.mrb[44].mxu0 }
 0xd79   :  { %v2760_v56 = vadd.f32 %v3766_v17, %v5107_v32  ;;  %v2704_v22 = vpop.f32.mrb[45].mxu0 }
 0xd7a   :  { %v2759_v18 = vadd.f32 %v2704_v22, %v5110_v45 }
 0xd7b   :  { %2768 = vst [vmem:[#allocation15 + $0x28] sm:$0xff] %v2760_v56 }
 0xd7c   :  { %2767 = vst [vmem:[#allocation15 + $0x20] sm:$0xff] %v2759_v18  ;;  %v3769_v20 = vpop.f32.mrb[46].mxu0 }
 0xd7d   :  { %v2762_v60 = vadd.f32 %v3769_v20, %v5115_v34  ;;  %v2714_v23 = vpop.f32.mrb[47].mxu0 }
 0xd7e   :  { %v2761_v62 = vadd.f32 %v2714_v23, %v5118_v36 }
 0xd7f   :  { %2770 = vst [vmem:[#allocation15 + $0x38] sm:$0xff] %v2762_v60 }
 0xd80   :  { %2769 = vst [vmem:[#allocation15 + $0x30] sm:$0xff] %v2761_v62 }
 0xd81   :  { %4451 = shalt.err (!%p4448_p4)
}
 0xd82   :  { %s5223_s22 = sld [smem:[#allocation21_spill]] }
 0xd88   :  { %s4452_s24 = scalar_lea.hbm %s5223_s22, 1024 }
 0xd89   :  { %p4453_p5 = scmp.ne.s32.totalorder %s5223_s22, %s4452_s24  ;;  %p4456_p6 = scmp.lt.u32.totalorder %s4452_s24, %s5223_s22 }
 0xd8b   :  { %p4458_p7 = pnand %p4456_p6, %p4453_p5 }
 0xd8d   :  { %4461 = shalt.err (!%p4458_p7)
}
 0xd8e   :  { %2782 = dma.vmem_to_hbm [thread:$0]  %s2777_s20, 1024, %s5223_s22, [#allocation5], %s4473_s28, %s4473_s28, %s4474_s29  }
 0xd8f   :  { %4470 = dma.done.wait [#allocation5], 1024  }
 0xd90   :  { %4471 = vsyncadd [#allocation5], 4294966272 }
 0xd91   :  { %2786 = vsyncpa [#allocation4], 1 }
 0xd92   :  { %2787 = vsyncpa [#allocation7], 1 }
 0xd93   :  { %2788 = vsyncpa [#allocation10], 1 }
 0xd94   :  { %2789 = vsyncpa [#allocation13], 1 }
 0xd95   :  { %2790 = vsyncpa [#allocation5], 1 }

</bundles_post_ra>
